<compile_context>
chip_gen: v7x
topology: tpu7x:2x2x1
jax: 0.10.0
libtpu: 0.0.40
codegen_flags: <defaults>
</compile_context>

<pallas_src>
import functools

import jax
import jax.numpy as jnp
from jax.experimental import pallas as pl
from jax.experimental.pallas import tpu as pltpu


def _round_up(x, m):
    return (x + m - 1) // m * m


# ----------------------------- Pallas kernel --------------------------------

def _gcn_layer_kernel(a_ref, h_ref, dk_ref, dn_ref, w_ref, b_ref, o_ref,
                      acc_ref, *, apply_relu):
    """One GCN layer, tiled over (row tiles i, reduction tiles k).

    a_ref  : (tile_n, tile_k) int8   binary (A+I) tile, values {0, 1}
    h_ref  : (tile_k, cin)    bf16   k-tile of node features
    dk_ref : (tile_k, 1)      f32    d^-1/2 for the k-tile rows of H
    dn_ref : (tile_n, 1)      f32    d^-1/2 for the output row tile
    w_ref  : (cin, cout)      bf16   BN-folded, zero-padded weight
    b_ref  : (1, cout)        f32    BN-folded, zero-padded bias
    o_ref  : (tile_n, cout)          layer output tile
    acc_ref: (tile_n, cin)    f32    aggregation accumulator (VMEM scratch)
    """
    k = pl.program_id(1)

    @pl.when(k == 0)
    def _init():
        acc_ref[...] = jnp.zeros_like(acc_ref)

    # Binary adjacency upcast int8 -> bf16 is exact; hidden under the A DMA.
    a = a_ref[...].astype(jnp.bfloat16)
    # Left D^-1/2: scale the H rows of this k-tile, then quantize to bf16.
    h = (h_ref[...].astype(jnp.float32) * dk_ref[...]).astype(jnp.bfloat16)
    acc_ref[...] += jnp.dot(a, h, preferred_element_type=jnp.float32)

    @pl.when(k == pl.num_programs(1) - 1)
    def _finalize():
        # Right D^-1/2 on the aggregated rows, then the small projection on the
        # MXU in bf16 with f32 accumulation, bias add, optional ReLU.
        agg = (acc_ref[...] * dn_ref[...]).astype(jnp.bfloat16)
        out = jnp.dot(agg, w_ref[...],
                      preferred_element_type=jnp.float32) + b_ref[...]
        if apply_relu:
            out = jnp.maximum(out, 0.0)
        o_ref[...] = out.astype(o_ref.dtype)


# --------------------------- tiling / VMEM budget ----------------------------

def _pick_tiles(N, tile_n, tile_k):
    """Clamp requested tiles to power-of-two multiples of 128 and pad N."""
    def pow2_mult_128(t, hi):
        t = max(128, min(t, hi))
        p = 128
        while p * 2 <= t:
            p *= 2
        return p

    n_ceil = _round_up(N, 128)
    tile_k = pow2_mult_128(tile_k, n_ceil)
    # Keep >= 2 row tiles so the "parallel" axis can shard across v7x's 2 TCs.
    row_cap = n_ceil if n_ceil < 256 else n_ceil // 2
    tile_n = pow2_mult_128(tile_n, row_cap)
    n_pad = _round_up(N, max(tile_n, tile_k))
    return tile_n, tile_k, n_pad


def _vmem_limit_bytes(tile_n, tile_k, cin, cout, out_itemsize, a_buffers):
    """Scoped-VMEM cap sized to the actual tile footprint, clamped per chip."""
    need = (a_buffers * tile_n * tile_k * 1            # int8 A tiles
            + 2 * (tile_k * cin * 2                    # bf16 H k-tile
                   + (tile_k + tile_n) * 4             # d^-1/2 slices
                   + cin * cout * 2 + cout * 4         # W (bf16) + bias (f32)
                   + tile_n * cout * out_itemsize)     # output tile
            + tile_n * cin * 4                         # f32 accumulator scratch
            + (4 << 20))                               # Mosaic internal headroom
    try:
        cap = getattr(pltpu.get_tpu_info(), "vmem_capacity_bytes", 64 << 20)
    except Exception:  # noqa: BLE001 - fall back to the smallest generation
        cap = 64 << 20
    return int(min(max(need, 48 << 20), (cap * 3) // 4))


# ----------------------------- layer wrapper --------------------------------

def gcn_layer(a_i8, h, dinv, w_pad, b_pad, *, apply_relu, out_dtype,
              tile_n, tile_k, a_buffers=2):
    """One GCNConv layer (BN already folded into w_pad/b_pad) via pallas_call."""
    n_pad = a_i8.shape[0]
    cin = h.shape[1]
    cout = w_pad.shape[1]
    assert n_pad % tile_n == 0 and n_pad % tile_k == 0
    assert h.shape[0] == n_pad and w_pad.shape[0] == cin

    kernel = functools.partial(_gcn_layer_kernel, apply_relu=apply_relu)
    out_itemsize = jnp.dtype(out_dtype).itemsize

    # Advisory cost estimate: aggregation dominates, plus H re-reads per row tile.
    grid_rows = n_pad // tile_n
    flops = 2 * n_pad * n_pad * cin + 2 * n_pad * cin * cout
    bytes_accessed = (n_pad * n_pad * 1                 # int8 A, read once
                      + grid_rows * n_pad * cin * 2     # H re-read per row tile
                      + n_pad * 8                       # d^-1/2 (read twice)
                      + cin * cout * 2 + cout * 4       # W + b
                      + n_pad * cout * out_itemsize)    # output
    cost = pl.CostEstimate(flops=int(flops), transcendentals=0,
                           bytes_accessed=int(bytes_accessed))

    if a_buffers == 2:   # default pipeline depth
        a_spec = pl.BlockSpec((tile_n, tile_k), lambda i, k: (i, k))
    else:                # e.g. 3 on v5e if a profile shows exposed A-tile DMA
        a_spec = pl.BlockSpec((tile_n, tile_k), lambda i, k: (i, k),
                              pipeline_mode=pl.Buffered(a_buffers))

    return pl.pallas_call(
        kernel,
        out_shape=jax.ShapeDtypeStruct((n_pad, cout), out_dtype),
        grid=(grid_rows, n_pad // tile_k),
        in_specs=[
            a_spec,                                                 # (A+I) int8
            pl.BlockSpec((tile_k, cin), lambda i, k: (k, 0)),       # H k-tile
            pl.BlockSpec((tile_k, 1),   lambda i, k: (k, 0)),       # d^-1/2 (k rows)
            pl.BlockSpec((tile_n, 1),   lambda i, k: (i, 0)),       # d^-1/2 (out rows)
            pl.BlockSpec((cin, cout),   lambda i, k: (0, 0)),       # W (folded, bf16)
            pl.BlockSpec((1, cout),     lambda i, k: (0, 0)),       # bias row
        ],
        out_specs=pl.BlockSpec((tile_n, cout), lambda i, k: (i, 0)),
        scratch_shapes=[pltpu.VMEM((tile_n, cin), jnp.float32)],
        compiler_params=pltpu.CompilerParams(
            dimension_semantics=("parallel", "arbitrary"),
            vmem_limit_bytes=_vmem_limit_bytes(tile_n, tile_k, cin, cout,
                                               out_itemsize, a_buffers)),
        cost_estimate=cost,
    )(a_i8, h, dinv, dinv, w_pad, b_pad)


# ------------------------------ full GCN model -------------------------------

def _fold_bn_and_pad(layer, cin_pad, has_bn):
    """Fold eval-mode BN into (W, b); zero-pad to lane-dense shapes; W in bf16."""
    w = layer["w"].astype(jnp.float32)
    b = layer["b"].astype(jnp.float32)
    if has_bn:
        s = layer["gamma"] * jax.lax.rsqrt(layer["var"] + 1e-5)
        w = w * s[None, :]
        b = (b - layer["mean"]) * s + layer["beta"]
    cin, cout = w.shape
    cout_pad = _round_up(cout, 128)
    w_pad = jnp.zeros((cin_pad, cout_pad), jnp.bfloat16)
    w_pad = w_pad.at[:cin, :cout].set(w.astype(jnp.bfloat16))
    b_pad = jnp.zeros((1, cout_pad), jnp.float32).at[0, :cout].set(b)
    return w_pad, b_pad, cout_pad


def prepare_gcn_inputs(x, adj, *, tile_n=1024, tile_k=1024):
    """One-time adjacency/feature preprocessing (mirrors GCNConv cached=True).

    adj: dense binary symmetric adjacency WITHOUT self loops, shape [N, N].
    Returns padded bf16 features, padded int8 (A+I), padded d^-1/2 column,
    and (n_valid, tile_n, tile_k).
    """
    N, c0 = x.shape
    tn, tk, n_pad = _pick_tiles(N, tile_n, tile_k)

    adj_sl = jnp.maximum(adj.astype(jnp.float32), jnp.eye(N, dtype=jnp.float32))
    deg = adj_sl.sum(axis=1)
    dinv = jax.lax.rsqrt(deg)

    a_i8 = jnp.zeros((n_pad, n_pad), jnp.int8)
    a_i8 = a_i8.at[:N, :N].set(adj_sl.astype(jnp.int8))
    dinv_pad = jnp.zeros((n_pad, 1), jnp.float32).at[:N, 0].set(dinv)

    c0_pad = _round_up(c0, 128)
    x_pad = jnp.zeros((n_pad, c0_pad), jnp.bfloat16)
    x_pad = x_pad.at[:N, :c0].set(x.astype(jnp.bfloat16))
    return x_pad, a_i8, dinv_pad, (N, tn, tk)


def gcn_forward(x_pad, a_i8, dinv_pad, params, *, n_valid, tile_n, tile_k,
                a_buffers=2):
    """params: list of dicts; all but the last carry BN params."""
    h = x_pad
    cin_pad = x_pad.shape[1]
    n_layers = len(params)
    final_width = params[-1]["w"].shape[1]
    for li, layer in enumerate(params):
        is_last = li == n_layers - 1
        w_pad, b_pad, cout_pad = _fold_bn_and_pad(layer, cin_pad,
                                                  has_bn=not is_last)
        h = gcn_layer(a_i8, h, dinv_pad, w_pad, b_pad,
                      apply_relu=not is_last,
                      out_dtype=jnp.float32 if is_last else jnp.bfloat16,
                      tile_n=tile_n, tile_k=tile_k, a_buffers=a_buffers)
        cin_pad = cout_pad
        # TODO(synk): F.dropout(training=False) is the identity; not emitted.
    return h[:n_valid, :final_width]   # strip row / lane padding


def gcn_forward_ref(x, a_hat, params):
    """Pure f32 reference matching the PyTorch module (eval mode)."""
    h = x
    for layer in params[:-1]:
        h = a_hat @ (h @ layer["w"]) + layer["b"]
        h = ((h - layer["mean"]) * jax.lax.rsqrt(layer["var"] + 1e-5)
             * layer["gamma"] + layer["beta"])
        h = jnp.maximum(h, 0.0)
    last = params[-1]
    return a_hat @ (h @ last["w"]) + last["b"]


# --------------------------------- main ---------------------------------------

if __name__ == "__main__":
    N = 256                 # number of graph nodes
    in_channels = 32
    hidden_channels = 64
    out_channels = 16
    num_layers = 3          # convs: in->hid, hid->hid, hid->out ; bns: 2

    key = jax.random.PRNGKey(0)
    k_x, k_adj, k_w = jax.random.split(key, 3)

    # Node features
    x = jax.random.normal(k_x, (N, in_channels), dtype=jnp.float32)

    # Dense symmetric binary adjacency (no self loops; prepare() adds them)
    raw = jax.random.bernoulli(k_adj, p=0.05, shape=(N, N)).astype(jnp.float32)
    adj = jnp.maximum(raw, raw.T)

    # Deterministic parameter init (glorot-ish weights, fresh BN stats)
    dims = [in_channels] + [hidden_channels] * (num_layers - 1) + [out_channels]
    params = []
    for li in range(num_layers):
        cin, cout = dims[li], dims[li + 1]
        k_w, sub = jax.random.split(k_w)
        scale = jnp.sqrt(2.0 / (cin + cout))
        layer = {
            "w": jax.random.normal(sub, (cin, cout), dtype=jnp.float32) * scale,
            "b": jnp.zeros((cout,), dtype=jnp.float32),
        }
        if li < num_layers - 1:
            # BatchNorm1d after reset_parameters(): gamma=1, beta=0, mean=0, var=1
            layer.update({
                "gamma": jnp.ones((cout,), dtype=jnp.float32),
                "beta": jnp.zeros((cout,), dtype=jnp.float32),
                "mean": jnp.zeros((cout,), dtype=jnp.float32),
                "var": jnp.ones((cout,), dtype=jnp.float32),
            })
        params.append(layer)

    # One-time (cached) preprocessing, analogous to GCNConv(cached=True).
    x_pad, a_i8, dinv_pad, (n_valid, tn, tk) = prepare_gcn_inputs(
        x, adj, tile_n=1024, tile_k=1024)

    fwd = jax.jit(functools.partial(gcn_forward, n_valid=n_valid,
                                    tile_n=tn, tile_k=tk))
    out = jax.block_until_ready(fwd(x_pad, a_i8, dinv_pad, params))

    # Pure f32 reference using the explicitly normalized A_hat.
    adj_sl = jnp.maximum(adj, jnp.eye(N, dtype=jnp.float32))
    deg = adj_sl.sum(axis=1)
    d_inv_sqrt = 1.0 / jnp.sqrt(deg)
    a_hat = adj_sl * d_inv_sqrt[:, None] * d_inv_sqrt[None, :]
    ref = gcn_forward_ref(x, a_hat, params)

    assert out.shape == (N, out_channels)
    # The adjacency path is exact (binary int8 + f32 d^-1/2); remaining error is
    # bf16 quantization of H / W / accumulator vs the pure-f32 reference.
    max_err = float(jnp.max(jnp.abs(out - ref)))
    assert jnp.allclose(out, ref, rtol=2e-2, atol=2e-2), max_err

    print("KERNEL_OK")
</pallas_src>

<mosaic_0001>
module attributes {stable_mosaic.version = 11 : i64} {
  func.func @_gcn_layer_kernel(%arg0: i32, %arg1: i32, %arg2: memref<128x256xi8, #tpu.memory_space<vmem>>, %arg3: memref<256x128xbf16, #tpu.memory_space<vmem>>, %arg4: memref<256x1xf32, #tpu.memory_space<vmem>>, %arg5: memref<128x1xf32, #tpu.memory_space<vmem>>, %arg6: memref<128x128xbf16, #tpu.memory_space<vmem>>, %arg7: memref<1x128xf32, #tpu.memory_space<vmem>>, %arg8: memref<128x128xbf16, #tpu.memory_space<vmem>>, %arg9: memref<128x128xf32, #tpu.memory_space<vmem>>) attributes {dimension_semantics = [#tpu.dimension_semantics<parallel>, #tpu.dimension_semantics<arbitrary>], iteration_bounds = array<i64: 2, 1>, scalar_prefetch = 0 : i64, scratch_operands = 1 : i64, tpu.core_type = #tpu.core_type<tc>, window_params = [{transform_indices = @transform_0, window_bounds = array<i64: 128, 256>}, {transform_indices = @transform_1, window_bounds = array<i64: 256, 128>}, {transform_indices = @transform_2, window_bounds = array<i64: 256, 1>}, {transform_indices = @transform_3, window_bounds = array<i64: 128, 1>}, {pipeline_mode = #tpu.pipeline_mode<synchronous>, transform_indices = @transform_4, window_bounds = array<i64: 128, 128>}, {pipeline_mode = #tpu.pipeline_mode<synchronous>, transform_indices = @transform_5, window_bounds = array<i64: 1, 128>}, {transform_indices = @transform_6, window_bounds = array<i64: 128, 128>}]} {
    %c0_i32 = arith.constant 0 : i32
    %0 = arith.cmpi eq, %arg1, %c0_i32 : i32
    %1 = arith.extui %0 : i1 to i32
    %c0_i32_0 = arith.constant 0 : i32
    %2 = arith.cmpi ne, %1, %c0_i32_0 : i32
    scf.if %2 {
      %cst_12 = arith.constant 0.000000e+00 : f32
      %18 = vector.broadcast %cst_12 : f32 to vector<128x128xf32>
      %c0_13 = arith.constant 0 : index
      %c0_14 = arith.constant 0 : index
      %19 = vector.load %arg9[%c0_13, %c0_14] : memref<128x128xf32, #tpu.memory_space<vmem>>, vector<128x128xf32>
      tpu.vector_store %arg9[%c0_13, %c0_14], %18 {strides = array<i32>} : memref<128x128xf32, #tpu.memory_space<vmem>>, vector<128x128xf32>,
    } else {
    }
    %c0 = arith.constant 0 : index
    %c0_1 = arith.constant 0 : index
    %3 = vector.load %arg2[%c0, %c0_1] : memref<128x256xi8, #tpu.memory_space<vmem>>, vector<128x256xi8>
    %4 = arith.sitofp %3 : vector<128x256xi8> to vector<128x256xbf16>
    %c0_2 = arith.constant 0 : index
    %c0_3 = arith.constant 0 : index
    %5 = vector.load %arg3[%c0_2, %c0_3] : memref<256x128xbf16, #tpu.memory_space<vmem>>, vector<256x128xbf16>
    %6 = arith.extf %5 : vector<256x128xbf16> to vector<256x128xf32>
    %c0_4 = arith.constant 0 : index
    %c0_5 = arith.constant 0 : index
    %7 = vector.load %arg4[%c0_4, %c0_5] : memref<256x1xf32, #tpu.memory_space<vmem>>, vector<256x1xf32>
    %8 = vector.broadcast %7 : vector<256x1xf32> to vector<256x128xf32>
    %9 = arith.mulf %6, %8 : vector<256x128xf32>
    %10 = arith.truncf %9 : vector<256x128xf32> to vector<256x128xbf16>
    %c0_6 = arith.constant 0 : index
    %c0_7 = arith.constant 0 : index
    %11 = vector.load %arg9[%c0_6, %c0_7] : memref<128x128xf32, #tpu.memory_space<vmem>>, vector<128x128xf32>
    %cst = arith.constant dense<0.000000e+00> : vector<128x128xf32>
    %12 = tpu.matmul %4, %10, %cst {dimension_numbers = #tpu.dot_dimension_numbers<[1], [0], [0], [1], [0, 0, 1, 1], [], []>} : vector<128x256xbf16>, vector<256x128xbf16>, vector<128x128xf32> -> vector<128x128xf32>
    %13 = arith.addf %11, %12 : vector<128x128xf32>
    %c0_8 = arith.constant 0 : index
    %c0_9 = arith.constant 0 : index
    %14 = vector.load %arg9[%c0_8, %c0_9] : memref<128x128xf32, #tpu.memory_space<vmem>>, vector<128x128xf32>
    tpu.vector_store %arg9[%c0_8, %c0_9], %13 {strides = array<i32>} : memref<128x128xf32, #tpu.memory_space<vmem>>, vector<128x128xf32>,
    %c0_i32_10 = arith.constant 0 : i32
    %15 = arith.cmpi eq, %arg1, %c0_i32_10 : i32
    %16 = arith.extui %15 : i1 to i32
    %c0_i32_11 = arith.constant 0 : i32
    %17 = arith.cmpi ne, %16, %c0_i32_11 : i32
    scf.if %17 {
      %c0_12 = arith.constant 0 : index
      %c0_13 = arith.constant 0 : index
      %18 = vector.load %arg9[%c0_12, %c0_13] : memref<128x128xf32, #tpu.memory_space<vmem>>, vector<128x128xf32>
      %c0_14 = arith.constant 0 : index
      %c0_15 = arith.constant 0 : index
      %19 = vector.load %arg5[%c0_14, %c0_15] : memref<128x1xf32, #tpu.memory_space<vmem>>, vector<128x1xf32>
      %20 = vector.broadcast %19 : vector<128x1xf32> to vector<128x128xf32>
      %21 = arith.mulf %18, %20 : vector<128x128xf32>
      %22 = arith.truncf %21 : vector<128x128xf32> to vector<128x128xbf16>
      %c0_16 = arith.constant 0 : index
      %c0_17 = arith.constant 0 : index
      %23 = vector.load %arg6[%c0_16, %c0_17] : memref<128x128xbf16, #tpu.memory_space<vmem>>, vector<128x128xbf16>
      %cst_18 = arith.constant dense<0.000000e+00> : vector<128x128xf32>
      %24 = tpu.matmul %22, %23, %cst_18 {dimension_numbers = #tpu.dot_dimension_numbers<[1], [0], [0], [1], [0, 0, 1, 1], [], []>} : vector<128x128xbf16>, vector<128x128xbf16>, vector<128x128xf32> -> vector<128x128xf32>
      %c0_19 = arith.constant 0 : index
      %c0_20 = arith.constant 0 : index
      %25 = vector.load %arg7[%c0_19, %c0_20] : memref<1x128xf32, #tpu.memory_space<vmem>>, vector<1x128xf32>
      %26 = vector.broadcast %25 : vector<1x128xf32> to vector<128x128xf32>
      %27 = arith.addf %24, %26 : vector<128x128xf32>
      %cst_21 = arith.constant 0.000000e+00 : f32
      %28 = vector.broadcast %cst_21 : f32 to vector<128x128xf32>
      %29 = arith.maximumf %27, %28 : vector<128x128xf32>
      %30 = arith.truncf %29 : vector<128x128xf32> to vector<128x128xbf16>
      %c0_22 = arith.constant 0 : index
      %c0_23 = arith.constant 0 : index
      %31 = vector.load %arg8[%c0_22, %c0_23] : memref<128x128xbf16, #tpu.memory_space<vmem>>, vector<128x128xbf16>
      tpu.vector_store %arg8[%c0_22, %c0_23], %30 {strides = array<i32>} : memref<128x128xbf16, #tpu.memory_space<vmem>>, vector<128x128xbf16>,
    } else {
    }
    return
  }
  func.func @transform_0(%arg0: i32, %arg1: i32) -> (i32, i32) {
    %c0_i32 = arith.constant 0 : i32
    return %arg0, %arg1 : i32, i32
  }
  func.func @transform_1(%arg0: i32, %arg1: i32) -> (i32, i32) {
    %c0_i32 = arith.constant 0 : i32
    %c0_i32_0 = arith.constant 0 : i32
    return %arg1, %c0_i32 : i32, i32
  }
  func.func @transform_2(%arg0: i32, %arg1: i32) -> (i32, i32) {
    %c0_i32 = arith.constant 0 : i32
    %c0_i32_0 = arith.constant 0 : i32
    return %arg1, %c0_i32 : i32, i32
  }
  func.func @transform_3(%arg0: i32, %arg1: i32) -> (i32, i32) {
    %c0_i32 = arith.constant 0 : i32
    %c0_i32_0 = arith.constant 0 : i32
    return %arg0, %c0_i32 : i32, i32
  }
  func.func @transform_4(%arg0: i32, %arg1: i32) -> (i32, i32) {
    %c0_i32 = arith.constant 0 : i32
    %c0_i32_0 = arith.constant 0 : i32
    %c0_i32_1 = arith.constant 0 : i32
    return %c0_i32, %c0_i32_0 : i32, i32
  }
  func.func @transform_5(%arg0: i32, %arg1: i32) -> (i32, i32) {
    %c0_i32 = arith.constant 0 : i32
    %c0_i32_0 = arith.constant 0 : i32
    %c0_i32_1 = arith.constant 0 : i32
    return %c0_i32, %c0_i32_0 : i32, i32
  }
  func.func @transform_6(%arg0: i32, %arg1: i32) -> (i32, i32) {
    %c0_i32 = arith.constant 0 : i32
    %c0_i32_0 = arith.constant 0 : i32
    return %arg0, %c0_i32 : i32, i32
  }
}

module attributes {stable_mosaic.version = 11 : i64} {
  func.func @_gcn_layer_kernel(%arg0: i32, %arg1: i32, %arg2: memref<128x256xi8, #tpu.memory_space<vmem>>, %arg3: memref<256x128xbf16, #tpu.memory_space<vmem>>, %arg4: memref<256x1xf32, #tpu.memory_space<vmem>>, %arg5: memref<128x1xf32, #tpu.memory_space<vmem>>, %arg6: memref<128x128xbf16, #tpu.memory_space<vmem>>, %arg7: memref<1x128xf32, #tpu.memory_space<vmem>>, %arg8: memref<128x128xf32, #tpu.memory_space<vmem>>, %arg9: memref<128x128xf32, #tpu.memory_space<vmem>>) attributes {dimension_semantics = [#tpu.dimension_semantics<parallel>, #tpu.dimension_semantics<arbitrary>], iteration_bounds = array<i64: 2, 1>, scalar_prefetch = 0 : i64, scratch_operands = 1 : i64, tpu.core_type = #tpu.core_type<tc>, window_params = [{transform_indices = @transform_0, window_bounds = array<i64: 128, 256>}, {transform_indices = @transform_1, window_bounds = array<i64: 256, 128>}, {transform_indices = @transform_2, window_bounds = array<i64: 256, 1>}, {transform_indices = @transform_3, window_bounds = array<i64: 128, 1>}, {pipeline_mode = #tpu.pipeline_mode<synchronous>, transform_indices = @transform_4, window_bounds = array<i64: 128, 128>}, {pipeline_mode = #tpu.pipeline_mode<synchronous>, transform_indices = @transform_5, window_bounds = array<i64: 1, 128>}, {transform_indices = @transform_6, window_bounds = array<i64: 128, 128>}]} {
    %c0_i32 = arith.constant 0 : i32
    %0 = arith.cmpi eq, %arg1, %c0_i32 : i32
    %1 = arith.extui %0 : i1 to i32
    %c0_i32_0 = arith.constant 0 : i32
    %2 = arith.cmpi ne, %1, %c0_i32_0 : i32
    scf.if %2 {
      %cst_12 = arith.constant 0.000000e+00 : f32
      %18 = vector.broadcast %cst_12 : f32 to vector<128x128xf32>
      %c0_13 = arith.constant 0 : index
      %c0_14 = arith.constant 0 : index
      %19 = vector.load %arg9[%c0_13, %c0_14] : memref<128x128xf32, #tpu.memory_space<vmem>>, vector<128x128xf32>
      tpu.vector_store %arg9[%c0_13, %c0_14], %18 {strides = array<i32>} : memref<128x128xf32, #tpu.memory_space<vmem>>, vector<128x128xf32>,
    } else {
    }
    %c0 = arith.constant 0 : index
    %c0_1 = arith.constant 0 : index
    %3 = vector.load %arg2[%c0, %c0_1] : memref<128x256xi8, #tpu.memory_space<vmem>>, vector<128x256xi8>
    %4 = arith.sitofp %3 : vector<128x256xi8> to vector<128x256xbf16>
    %c0_2 = arith.constant 0 : index
    %c0_3 = arith.constant 0 : index
    %5 = vector.load %arg3[%c0_2, %c0_3] : memref<256x128xbf16, #tpu.memory_space<vmem>>, vector<256x128xbf16>
    %6 = arith.extf %5 : vector<256x128xbf16> to vector<256x128xf32>
    %c0_4 = arith.constant 0 : index
    %c0_5 = arith.constant 0 : index
    %7 = vector.load %arg4[%c0_4, %c0_5] : memref<256x1xf32, #tpu.memory_space<vmem>>, vector<256x1xf32>
    %8 = vector.broadcast %7 : vector<256x1xf32> to vector<256x128xf32>
    %9 = arith.mulf %6, %8 : vector<256x128xf32>
    %10 = arith.truncf %9 : vector<256x128xf32> to vector<256x128xbf16>
    %c0_6 = arith.constant 0 : index
    %c0_7 = arith.constant 0 : index
    %11 = vector.load %arg9[%c0_6, %c0_7] : memref<128x128xf32, #tpu.memory_space<vmem>>, vector<128x128xf32>
    %cst = arith.constant dense<0.000000e+00> : vector<128x128xf32>
    %12 = tpu.matmul %4, %10, %cst {dimension_numbers = #tpu.dot_dimension_numbers<[1], [0], [0], [1], [0, 0, 1, 1], [], []>} : vector<128x256xbf16>, vector<256x128xbf16>, vector<128x128xf32> -> vector<128x128xf32>
    %13 = arith.addf %11, %12 : vector<128x128xf32>
    %c0_8 = arith.constant 0 : index
    %c0_9 = arith.constant 0 : index
    %14 = vector.load %arg9[%c0_8, %c0_9] : memref<128x128xf32, #tpu.memory_space<vmem>>, vector<128x128xf32>
    tpu.vector_store %arg9[%c0_8, %c0_9], %13 {strides = array<i32>} : memref<128x128xf32, #tpu.memory_space<vmem>>, vector<128x128xf32>,
    %c0_i32_10 = arith.constant 0 : i32
    %15 = arith.cmpi eq, %arg1, %c0_i32_10 : i32
    %16 = arith.extui %15 : i1 to i32
    %c0_i32_11 = arith.constant 0 : i32
    %17 = arith.cmpi ne, %16, %c0_i32_11 : i32
    scf.if %17 {
      %c0_12 = arith.constant 0 : index
      %c0_13 = arith.constant 0 : index
      %18 = vector.load %arg9[%c0_12, %c0_13] : memref<128x128xf32, #tpu.memory_space<vmem>>, vector<128x128xf32>
      %c0_14 = arith.constant 0 : index
      %c0_15 = arith.constant 0 : index
      %19 = vector.load %arg5[%c0_14, %c0_15] : memref<128x1xf32, #tpu.memory_space<vmem>>, vector<128x1xf32>
      %20 = vector.broadcast %19 : vector<128x1xf32> to vector<128x128xf32>
      %21 = arith.mulf %18, %20 : vector<128x128xf32>
      %22 = arith.truncf %21 : vector<128x128xf32> to vector<128x128xbf16>
      %c0_16 = arith.constant 0 : index
      %c0_17 = arith.constant 0 : index
      %23 = vector.load %arg6[%c0_16, %c0_17] : memref<128x128xbf16, #tpu.memory_space<vmem>>, vector<128x128xbf16>
      %cst_18 = arith.constant dense<0.000000e+00> : vector<128x128xf32>
      %24 = tpu.matmul %22, %23, %cst_18 {dimension_numbers = #tpu.dot_dimension_numbers<[1], [0], [0], [1], [0, 0, 1, 1], [], []>} : vector<128x128xbf16>, vector<128x128xbf16>, vector<128x128xf32> -> vector<128x128xf32>
      %c0_19 = arith.constant 0 : index
      %c0_20 = arith.constant 0 : index
      %25 = vector.load %arg7[%c0_19, %c0_20] : memref<1x128xf32, #tpu.memory_space<vmem>>, vector<1x128xf32>
      %26 = vector.broadcast %25 : vector<1x128xf32> to vector<128x128xf32>
      %27 = arith.addf %24, %26 : vector<128x128xf32>
      %c0_21 = arith.constant 0 : index
      %c0_22 = arith.constant 0 : index
      %28 = vector.load %arg8[%c0_21, %c0_22] : memref<128x128xf32, #tpu.memory_space<vmem>>, vector<128x128xf32>
      tpu.vector_store %arg8[%c0_21, %c0_22], %27 {strides = array<i32>} : memref<128x128xf32, #tpu.memory_space<vmem>>, vector<128x128xf32>,
    } else {
    }
    return
  }
  func.func @transform_0(%arg0: i32, %arg1: i32) -> (i32, i32) {
    %c0_i32 = arith.constant 0 : i32
    return %arg0, %arg1 : i32, i32
  }
  func.func @transform_1(%arg0: i32, %arg1: i32) -> (i32, i32) {
    %c0_i32 = arith.constant 0 : i32
    %c0_i32_0 = arith.constant 0 : i32
    return %arg1, %c0_i32 : i32, i32
  }
  func.func @transform_2(%arg0: i32, %arg1: i32) -> (i32, i32) {
    %c0_i32 = arith.constant 0 : i32
    %c0_i32_0 = arith.constant 0 : i32
    return %arg1, %c0_i32 : i32, i32
  }
  func.func @transform_3(%arg0: i32, %arg1: i32) -> (i32, i32) {
    %c0_i32 = arith.constant 0 : i32
    %c0_i32_0 = arith.constant 0 : i32
    return %arg0, %c0_i32 : i32, i32
  }
  func.func @transform_4(%arg0: i32, %arg1: i32) -> (i32, i32) {
    %c0_i32 = arith.constant 0 : i32
    %c0_i32_0 = arith.constant 0 : i32
    %c0_i32_1 = arith.constant 0 : i32
    return %c0_i32, %c0_i32_0 : i32, i32
  }
  func.func @transform_5(%arg0: i32, %arg1: i32) -> (i32, i32) {
    %c0_i32 = arith.constant 0 : i32
    %c0_i32_0 = arith.constant 0 : i32
    %c0_i32_1 = arith.constant 0 : i32
    return %c0_i32, %c0_i32_0 : i32, i32
  }
  func.func @transform_6(%arg0: i32, %arg1: i32) -> (i32, i32) {
    %c0_i32 = arith.constant 0 : i32
    %c0_i32_0 = arith.constant 0 : i32
    return %arg0, %c0_i32 : i32, i32
  }
}

</mosaic_0001>

<bundles_post_ra>
// kernel: gcn_forward.3
= control target key start
LH: loop header
LB: loop body
LE: loop exit
PB: predicated region body
PF: predicated region fallthrough
CT: control target
= control target key end

     0   :  { %s1753_s21 = smov 0   ;;  %s1755_s22 = smov 0   ;;  %s2010_s0 = inlined_call_operand.vmem [shape: s8[256,256], index: 0, kind: input, shape index: {}]   ;;  %s2011_s1 = inlined_call_operand.vmem [shape: bf16[256,128], index: 1, kind: input, shape index: {}]   ;;  %s2012_s2 = inlined_call_operand.vmem [shape: f32[256,1], index: 2, kind: input, shape index: {}, may-alias: {2,3}]   ;;  %s2013_s3 = inlined_call_operand.vmem [shape: f32[256,1], index: 3, kind: input, shape index: {}, may-alias: {2,3}]   ;;  %s2014_s4 = inlined_call_operand.vmem [shape: bf16[128,128], index: 4, kind: input, shape index: {}]   ;;  %s2015_s5 = inlined_call_operand.vmem [shape: f32[1,128], index: 5, kind: input, shape index: {}]   ;;  %s2016_s6 = inlined_call_operand.vmem [shape: bf16[256,128], index: 6, kind: output, shape index: {}]  }
   0x1   :  { %s1757_s23 = smov 0  }
   0x2 LB: > { %s28_s24 = sadd.s32 1, %s1711_s22  ;;  %p1368_p0 = scmp.ge.s32.totalorder %s1715_s23, 1  ;;  %s1715_s23 = sphi %s1757_s23, %s16_s23   ;;  %s1711_s22 = sphi %s1755_s22, %s2018_s22   ;;  %s1707_s21 = sphi %s1753_s21, %s2017_s21  }
   0x3   : > { %p30_p1 = scmp.ge.s32.totalorder %s28_s24, 2  ;;  %p266_p2 = scmp.lt.s32.totalorder %s1715_s23, 3 }
   0x5   : > { %s2020_s24 = smov (%p30_p1, %s28_s24), 0  ;;  %p267_p3 = pnand %p1368_p0, %p266_p2 }
   0x6   : > { %v477_v0 = vld [vmem:[%s2012_s2 + $0x80] sm:$0xff] (!%p267_p3)  ;;  %v1717_v2 = vmov (!%p267_p3), 0   ;;  %v478_v3 = vld [vmem:[%s2012_s2 + $0x88] sm:$0xff] (!%p267_p3)  ;;  %v479_v5 = vld [vmem:[%s2012_s2 + $0x90] sm:$0xff] (!%p267_p3)  ;;  %s1372_s9 = sshll.u32 (!%p267_p3), %s1707_s21, 4  ;;  %s1369_s27 = sshll.u32 (!%p267_p3), %s1707_s21, 2 }
   0x7   : > { %270 = sbr.rel (%p267_p3) target bundleno = 702 (0x2be), region = 44  ;;  %v461_v1 = vld [vmem:[%s2012_s2] sm:$0xff] (!%p267_p3)  ;;  %1684 = vset.pattern.permute.xlu1 (!%p267_p3), %v1717_v2  ;;  %1683 = vset.pattern.permute.xlu0 (!%p267_p3), %v1717_v2  ;;  %v462_v4 = vld [vmem:[%s2012_s2 + $0x8] sm:$0xff] (!%p267_p3)  ;;  %v480_v6 = vld [vmem:[%s2012_s2 + $0x98] sm:$0xff] (!%p267_p3)  ;;  %p341_p4 = scmp.lt.s32.totalorder (!%p267_p3), %s1372_s9, 31 }
   0x8   : > { %575 = vperm.xlu0 (!%p267_p3), %1683, %v477_v0   ;;  %495 = vperm.xlu1 (!%p267_p3), %1684, %v461_v1   ;;  %v463_v7 = vld [vmem:[%s2012_s2 + $0x10] sm:$0xff] (!%p267_p3)  ;;  %v464_v8 = vld [vmem:[%s2012_s2 + $0x18] sm:$0xff] (!%p267_p3)  ;;  %v481_v9 = vld [vmem:[%s2012_s2 + $0xa0] sm:$0xff] (!%p267_p3)  ;;  %p318_p5 = scmp.lt.s32.totalorder (!%p267_p3), %s1369_s27, 7 }
   0x9   : > { %v482_v10 = vld [vmem:[%s2012_s2 + $0xa8] sm:$0xff] (!%p267_p3)  ;;  %v465_v11 = vld [vmem:[%s2012_s2 + $0x20] sm:$0xff] (!%p267_p3)  ;;  %v483_v13 = vld [vmem:[%s2012_s2 + $0xb0] sm:$0xff] (!%p267_p3) }
   0xa   : > { %v466_v12 = vld [vmem:[%s2012_s2 + $0x28] sm:$0xff] (!%p267_p3)  ;;  %v484_v14 = vld [vmem:[%s2012_s2 + $0xb8] sm:$0xff] (!%p267_p3)  ;;  %v467_v15 = vld [vmem:[%s2012_s2 + $0x30] sm:$0xff] (!%p267_p3) }
   0xb   : > { %v468_v16 = vld [vmem:[%s2012_s2 + $0x38] sm:$0xff] (!%p267_p3)  ;;  %v485_v17 = vld [vmem:[%s2012_s2 + $0xc0] sm:$0xff] (!%p267_p3)  ;;  %v486_v18 = vld [vmem:[%s2012_s2 + $0xc8] sm:$0xff] (!%p267_p3) }
   0xc   : > { %580 = vperm.xlu0 (!%p267_p3), %1683, %v478_v3   ;;  %500 = vperm.xlu1 (!%p267_p3), %1684, %v462_v4   ;;  %v469_v19 = vld [vmem:[%s2012_s2 + $0x40] sm:$0xff] (!%p267_p3)  ;;  %v470_v20 = vld [vmem:[%s2012_s2 + $0x48] sm:$0xff] (!%p267_p3)  ;;  %v487_v21 = vld [vmem:[%s2012_s2 + $0xd0] sm:$0xff] (!%p267_p3) }
   0xd   : > { %v488_v22 = vld [vmem:[%s2012_s2 + $0xd8] sm:$0xff] (!%p267_p3)  ;;  %v471_v23 = vld [vmem:[%s2012_s2 + $0x50] sm:$0xff] (!%p267_p3)  ;;  %v489_v25 = vld [vmem:[%s2012_s2 + $0xe0] sm:$0xff] (!%p267_p3) }
   0xe   : > { %v472_v24 = vld [vmem:[%s2012_s2 + $0x58] sm:$0xff]  ;;  %v490_v26 = vld [vmem:[%s2012_s2 + $0xe8] sm:$0xff]  ;;  %v473_v27 = vld [vmem:[%s2012_s2 + $0x60] sm:$0xff]  ;;  %s2022_s9 = smov (!%p341_p4, %s1372_s9), 31  ;;  %s2024_s27 = smov (!%p318_p5, %s1369_s27), 7 }
   0xf   : > { %v474_v28 = vld [vmem:[%s2012_s2 + $0x68] sm:$0xff]  ;;  %v491_v29 = vld [vmem:[%s2012_s2 + $0xf0] sm:$0xff]  ;;  %v492_v30 = vld [vmem:[%s2012_s2 + $0xf8] sm:$0xff]  ;;  %s1373_s26 = sshll.u32 %s2022_s9, 3  ;;  %s1403_s21 = sshll.u32 %s2024_s27, 4 }
  0x10   : > { %585 = vperm.xlu0 %1683, %v479_v5   ;;  %590 = vperm.xlu1 %1684, %v480_v6   ;;  %v475_v31 = vld [vmem:[%s2012_s2 + $0x70] sm:$0xff]  ;;  %v476_v32 = vld [vmem:[%s2012_s2 + $0x78] sm:$0xff]  ;;  %s1877_s11 = scalar_lea.vmem %s2013_s3, %s1373_s26  ;;  %s1884_s14 = scalar_lea.vmem %s2010_s0, %s1403_s21  ;;  %v1685_v51 = vld [vmem:[%s2014_s4] sm:$0xff]  }
  0x11   : > { %v866_v33 = vld [vmem:[%s1877_s11 + $0x8] sm:$0xff]  ;;  %v865_v34 = vld [vmem:[%s1877_s11] sm:$0xff]  ;;  %v868_v37 = vld [vmem:[%s1877_s11 + $0x18] sm:$0xff]  ;;  %1626 = vmatprep.subr.bf16.mxu1 %v1685_v51  ;;  %s1375_s30 = sshll.u32 %s2022_s9, 2 }
  0x12   : > { %v1887_v35 = vld [vmem:[%s1884_s14 + $0x8] sm:$0xff]  ;;  %v867_v38 = vld [vmem:[%s1877_s11 + $0x10] sm:$0xff]  ;;  %v869_v40 = vld [vmem:[%s1877_s11 + $0x20] sm:$0xff]  ;;  %1627 = vmatpush3.bf16.msra.mxu1 %v1685_v51  ;;  %s1991_s10 = scalar_lea.vmem %s2016_s6, %s1375_s30 }
  0x13   : > { %v382_v36 = vunpack.c.l.s8.bf16 %v1887_v35  ;;  %v870_v39 = vld [vmem:[%s1877_s11 + $0x28] sm:$0xff]  ;;  %v872_v41 = vld [vmem:[%s1877_s11 + $0x38] sm:$0xff]  ;;  %v871_v42 = vld [vmem:[%s1877_s11 + $0x30] sm:$0xff] }
  0x14   : > { %505 = vperm.xlu0 %1683, %v463_v7   ;;  %510 = vperm.xlu1 %1684, %v464_v8   ;;  %v874_v43 = vld [vmem:[%s1877_s11 + $0x48] sm:$0xff]  ;;  %v873_v44 = vld [vmem:[%s1877_s11 + $0x40] sm:$0xff]  ;;  %v876_v45 = vld [vmem:[%s1877_s11 + $0x58] sm:$0xff] }
  0x15   : > { %749 = vmatprep.mubr.bf16.mxu0 %v382_v36  ;;  %v875_v46 = vld [vmem:[%s1877_s11 + $0x50] sm:$0xff]  ;;  %v878_v47 = vld [vmem:[%s1877_s11 + $0x68] sm:$0xff]  ;;  %v877_v48 = vld [vmem:[%s1877_s11 + $0x60] sm:$0xff] }
  0x16   : > { %v880_v49 = vld [vmem:[%s1877_s11 + $0x78] sm:$0xff]  ;;  %v879_v50 = vld [vmem:[%s1877_s11 + $0x70] sm:$0xff]  ;;  %v1686_v52 = vld [vmem:[%s2014_s4 + $0x8] sm:$0xff]  }
  0x17   : > { %v1531_v53 = vld [vmem:[%s2011_s1 + $0x40] sm:$0xff]   ;;  %1628 = vmatprep.subr.bf16.mxu1 %v1686_v52  ;;  %v1687_v57 = vld [vmem:[%s2014_s4 + $0x10] sm:$0xff]   ;;  %v1532_v62 = vld [vmem:[%s2011_s1 + $0x48] sm:$0xff]  }
  0x18   : > { %595 = vperm.xlu0 %1683, %v481_v9   ;;  %600 = vperm.xlu1 %1684, %v482_v10   ;;  %v1421_v54 = vld [vmem:[%s2011_s1] sm:$0xff]   ;;  %v1454_v58 = vunpack.c.l.bf16 %v1531_v53  ;;  %v1455_v60 = vunpack.c.h.bf16 %v1531_v53  ;;  %v1458_v1 = vunpack.c.l.bf16 %v1532_v62  ;;  %v1459_v2 = vunpack.c.h.bf16 %v1532_v62  ;;  %v1688_v3 = vld [vmem:[%s2014_s4 + $0x18] sm:$0xff]   ;;  %v1524_v8 = vld [vmem:[%s2011_s1 + $0x8] sm:$0xff]  }
  0x19   : > { %v1422_v59 = vunpack.c.l.bf16 %v1421_v54  ;;  %v1423_v61 = vunpack.c.h.bf16 %v1421_v54  ;;  %1629 = vmatpush3.bf16.msra.mxu1 %v1686_v52 }
  0x1a   : > { %1630 = vmatprep.subr.bf16.mxu1 %v1687_v57 }
  0x1c   : > { %515 = vperm.xlu0 %1683, %v465_v11   ;;  %520 = vperm.xlu1 %1684, %v466_v12  }
  0x1d   : > { %1631 = vmatpush3.bf16.msra.mxu1 %v1687_v57 }
  0x1e   : > { %1632 = vmatprep.subr.bf16.mxu1 %v1688_v3 }
  0x20   : > { %605 = vperm.xlu0 %1683, %v483_v13   ;;  %610 = vperm.xlu1 %1684, %v484_v14  }
  0x21   : > { %1633 = vmatpush3.bf16.msra.mxu1 %v1688_v3 }
  0x24   : > { %525 = vperm.xlu0 %1683, %v467_v15   ;;  %530 = vperm.xlu1 %1684, %v468_v16   ;;  %v1426_v15 = vunpack.c.l.bf16 %v1524_v8  ;;  %v1427_v16 = vunpack.c.h.bf16 %v1524_v8 }
  0x28   : > { %615 = vperm.xlu0 %1683, %v485_v17   ;;  %620 = vperm.xlu1 %1684, %v486_v18   ;;  %v1533_v17 = vld [vmem:[%s2011_s1 + $0x50] sm:$0xff]  }
  0x2c   : > { %535 = vperm.xlu0 %1683, %v469_v19   ;;  %540 = vperm.xlu1 %1684, %v470_v20  }
  0x30   : > { %625 = vperm.xlu0 %1683, %v487_v21   ;;  %630 = vperm.xlu1 %1684, %v488_v22  }
  0x34   : > { %545 = vperm.xlu0 %1683, %v471_v23   ;;  %550 = vperm.xlu1 %1684, %v472_v24   ;;  %v1462_v23 = vunpack.c.l.bf16 %v1533_v17  ;;  %v1463_v24 = vunpack.c.h.bf16 %v1533_v17 }
  0x38   : > { %635 = vperm.xlu0 %1683, %v489_v25   ;;  %640 = vperm.xlu1 %1684, %v490_v26   ;;  %v1525_v25 = vld [vmem:[%s2011_s1 + $0x10] sm:$0xff]  }
  0x3c   : > { %555 = vperm.xlu0 %1683, %v473_v27   ;;  %560 = vperm.xlu1 %1684, %v474_v28  }
  0x40   : > { %645 = vperm.xlu0 %1683, %v491_v29   ;;  %650 = vperm.xlu1 %1684, %v492_v30  }
  0x44   : > { %565 = vperm.xlu0 %1683, %v475_v31   ;;  %570 = vperm.xlu1 %1684, %v476_v32   ;;  %v1430_v31 = vunpack.c.l.bf16 %v1525_v25  ;;  %v1431_v32 = vunpack.c.h.bf16 %v1525_v25 }
  0x48   : > { %888 = vperm.xlu1 %1684, %v866_v33   ;;  %883 = vperm.xlu0 %1683, %v865_v34   ;;  %v1534_v33 = vld [vmem:[%s2011_s1 + $0x58] sm:$0xff]  }
  0x4c   : > { %898 = vperm.xlu1 %1684, %v868_v37   ;;  %893 = vperm.xlu0 %1683, %v867_v38  }
  0x50   : > { %908 = vperm.xlu1 %1684, %v870_v39   ;;  %903 = vperm.xlu0 %1683, %v869_v40   ;;  %v1466_v40 = vunpack.c.l.bf16 %v1534_v33 }
  0x54   : > { %918 = vperm.xlu1 %1684, %v872_v41   ;;  %913 = vperm.xlu0 %1683, %v871_v42   ;;  %v1467_v41 = vunpack.c.h.bf16 %v1534_v33  ;;  %v1526_v42 = vld [vmem:[%s2011_s1 + $0x18] sm:$0xff]  }
  0x58   : > { %928 = vperm.xlu1 %1684, %v874_v43   ;;  %923 = vperm.xlu0 %1683, %v873_v44  }
  0x5c   : > { %938 = vperm.xlu1 %1684, %v876_v45   ;;  %933 = vperm.xlu0 %1683, %v875_v46  }
  0x60   : > { %948 = vperm.xlu1 %1684, %v878_v47   ;;  %943 = vperm.xlu0 %1683, %v877_v48   ;;  %v1434_v48 = vunpack.c.l.bf16 %v1526_v42 }
  0x64   : > { %958 = vperm.xlu1 %1684, %v880_v49   ;;  %953 = vperm.xlu0 %1683, %v879_v50   ;;  %v1435_v49 = vunpack.c.h.bf16 %v1526_v42  ;;  %v1535_v50 = vld [vmem:[%s2011_s1 + $0x60] sm:$0xff]  }
  0x65   : > { %v1471_v57 = vunpack.c.h.bf16 %v1535_v50 }
  0x87   : > { %v576_v55 = vpop.permute.xlu0 %575  ;;  %v496_v56 = vpop.permute.xlu1 %495 }
  0x88   : > { %v669_v4 = vmul.f32 %v1454_v58, %v576_v55  ;;  %v653_v5 = vmul.f32 %v1422_v59, %v496_v56  ;;  %v1470_v56 = vunpack.c.l.bf16 %v1535_v50  ;;  %v1527_v58 = vld [vmem:[%s2011_s1 + $0x20] sm:$0xff]  }
  0x8b   : > { %v581_v63 = vpop.permute.xlu0 %580  ;;  %v501_v0 = vpop.permute.xlu1 %500 }
  0x8c   : > { %v670_v6 = vmul.f32 %v1455_v60, %v581_v63  ;;  %v654_v7 = vmul.f32 %v1423_v61, %v501_v0  ;;  %v1438_v0 = vunpack.c.l.bf16 %v1527_v58 }
  0x8e   : > { %v693_v9 = vpack.c.bf16 %v670_v6, %v669_v4  ;;  %v685_v10 = vpack.c.bf16 %v654_v7, %v653_v5 }
  0x8f   : > { %v586_v11 = vpop.permute.xlu0 %585  ;;  %v591_v12 = vpop.permute.xlu1 %590 }
  0x90   : > { %v671_v13 = vmul.f32 %v1458_v1, %v586_v11  ;;  %v672_v14 = vmul.f32 %v1459_v2, %v591_v12  ;;  %1546 = vmatprep.subr.bf16.mxu0 %v693_v9  ;;  %v1439_v1 = vunpack.c.h.bf16 %v1527_v58  ;;  %v1536_v2 = vld [vmem:[%s2011_s1 + $0x68] sm:$0xff]  }
  0x91   : > { %1547 = vmatpush3.bf16.msra.mxu0 %v685_v10  ;;  %v1474_v8 = vunpack.c.l.bf16 %v1536_v2  ;;  %v1475_v9 = vunpack.c.h.bf16 %v1536_v2  ;;  %v1528_v10 = vld [vmem:[%s2011_s1 + $0x28] sm:$0xff]  }
  0x92   : > { %v694_v18 = vpack.c.bf16 %v672_v14, %v671_v13  ;;  %v1443_v17 = vunpack.c.h.bf16 %v1528_v10  ;;  %v378_v2 = vld [vmem:[%s1884_s14 + $0x28] sm:$0xff] }
  0x93   : > { %v506_v19 = vpop.permute.xlu0 %505  ;;  %v511_v20 = vpop.permute.xlu1 %510 }
  0x94   : > { %v655_v21 = vmul.f32 %v1426_v15, %v506_v19  ;;  %v656_v22 = vmul.f32 %v1427_v16, %v511_v20  ;;  %1548 = vmatprep.subr.bf16.mxu0 %v694_v18  ;;  %v1442_v16 = vunpack.c.l.bf16 %v1528_v10  ;;  %v1537_v18 = vld [vmem:[%s2011_s1 + $0x70] sm:$0xff]  }
  0x95   : > { %v1479_v25 = vunpack.c.h.bf16 %v1537_v18  ;;  %v379_v10 = vld [vmem:[%s1884_s14 + $0x30] sm:$0xff] }
  0x96   : > { %v686_v26 = vpack.c.bf16 %v656_v22, %v655_v21 }
  0x97   : > { %v596_v27 = vpop.permute.xlu0 %595  ;;  %v601_v28 = vpop.permute.xlu1 %600 }
  0x98   : > { %v673_v29 = vmul.f32 %v1462_v23, %v596_v27  ;;  %v674_v30 = vmul.f32 %v1463_v24, %v601_v28  ;;  %1549 = vmatpush3.bf16.msra.mxu0 %v686_v26  ;;  %v1478_v24 = vunpack.c.l.bf16 %v1537_v18  ;;  %v1529_v26 = vld [vmem:[%s2011_s1 + $0x30] sm:$0xff]  }
  0x99   : > { %v1447_v33 = vunpack.c.h.bf16 %v1529_v26 }
  0x9a   : > { %v695_v34 = vpack.c.bf16 %v674_v30, %v673_v29 }
  0x9b   : > { %v516_v36 = vpop.permute.xlu0 %515  ;;  %v521_v37 = vpop.permute.xlu1 %520 }
  0x9c   : > { %v657_v38 = vmul.f32 %v1430_v31, %v516_v36  ;;  %v658_v39 = vmul.f32 %v1431_v32, %v521_v37  ;;  %1550 = vmatprep.subr.bf16.mxu0 %v695_v34  ;;  %v1446_v32 = vunpack.c.l.bf16 %v1529_v26  ;;  %v1538_v34 = vld [vmem:[%s2011_s1 + $0x78] sm:$0xff]  }
  0x9d   : > { %v1483_v42 = vunpack.c.h.bf16 %v1538_v34 }
  0x9e   : > { %v687_v43 = vpack.c.bf16 %v658_v39, %v657_v38 }
  0x9f   : > { %v606_v44 = vpop.permute.xlu0 %605  ;;  %v611_v45 = vpop.permute.xlu1 %610 }
  0xa0   : > { %v675_v46 = vmul.f32 %v1466_v40, %v606_v44  ;;  %v676_v47 = vmul.f32 %v1467_v41, %v611_v45  ;;  %1551 = vmatpush3.bf16.msra.mxu0 %v687_v43  ;;  %v1482_v41 = vunpack.c.l.bf16 %v1538_v34  ;;  %v1530_v43 = vld [vmem:[%s2011_s1 + $0x38] sm:$0xff]  }
  0xa1   : > { %v1451_v50 = vunpack.c.h.bf16 %v1530_v43 }
  0xa2   : > { %v696_v51 = vpack.c.bf16 %v676_v47, %v675_v46 }
  0xa3   : > { %v526_v52 = vpop.permute.xlu0 %525  ;;  %v531_v53 = vpop.permute.xlu1 %530 }
  0xa4   : > { %v659_v54 = vmul.f32 %v1434_v48, %v526_v52  ;;  %v660_v55 = vmul.f32 %v1435_v49, %v531_v53  ;;  %1552 = vmatprep.subr.bf16.mxu0 %v696_v51  ;;  %v1450_v49 = vunpack.c.l.bf16 %v1530_v43 }
  0xa6   : > { %v688_v59 = vpack.c.bf16 %v660_v55, %v659_v54 }
  0xa7   : > { %v616_v60 = vpop.permute.xlu0 %615  ;;  %v621_v61 = vpop.permute.xlu1 %620 }
  0xa8   : > { %v677_v62 = vmul.f32 %v1470_v56, %v616_v60  ;;  %v678_v63 = vmul.f32 %v1471_v57, %v621_v61  ;;  %1553 = vmatpush3.bf16.msra.mxu0 %v688_v59  ;;  %v373_v56 = vld [vmem:[%s1884_s14] sm:$0xff]  ;;  %v384_v59 = vunpack.c.h.s8.bf16 %v1887_v35  ;;  %v376_v60 = vld [vmem:[%s1884_s14 + $0x18] sm:$0xff] }
  0xa9   : > { %v381_v58 = vunpack.c.l.s8.bf16 %v373_v56  ;;  %v383_v61 = vunpack.c.h.s8.bf16 %v373_v56  ;;  %v377_v35 = vld [vmem:[%s1884_s14 + $0x20] sm:$0xff] }
  0xaa   : > { %v697_v3 = vpack.c.bf16 %v678_v63, %v677_v62  ;;  %v386_v62 = vunpack.c.l.s8.bf16 %v376_v60  ;;  %v375_v63 = vld [vmem:[%s1884_s14 + $0x10] sm:$0xff] }
  0xab   : > { %v536_v4 = vpop.permute.xlu0 %535  ;;  %v541_v5 = vpop.permute.xlu1 %540 }
  0xac   : > { %v661_v6 = vmul.f32 %v1438_v0, %v536_v4  ;;  %v662_v7 = vmul.f32 %v1439_v1, %v541_v5  ;;  %1554 = vmatprep.subr.bf16.mxu0 %v697_v3  ;;  %v385_v0 = vunpack.c.l.s8.bf16 %v375_v63  ;;  %v388_v1 = vunpack.c.h.s8.bf16 %v376_v60 }
  0xad   : > { %v387_v3 = vunpack.c.h.s8.bf16 %v375_v63  ;;  %v390_v4 = vunpack.c.l.s8.bf16 %v378_v2  ;;  %v389_v5 = vunpack.c.l.s8.bf16 %v377_v35 }
  0xae   : > { %v689_v11 = vpack.c.bf16 %v662_v7, %v661_v6  ;;  %v392_v6 = vunpack.c.h.s8.bf16 %v378_v2  ;;  %v380_v7 = vld [vmem:[%s1884_s14 + $0x38] sm:$0xff] }
  0xaf   : > { %v626_v12 = vpop.permute.xlu0 %625  ;;  %v631_v13 = vpop.permute.xlu1 %630 }
  0xb0   : > { %v679_v14 = vmul.f32 %v1474_v8, %v626_v12  ;;  %v680_v15 = vmul.f32 %v1475_v9, %v631_v13  ;;  %1555 = vmatpush3.bf16.msra.mxu0 %v689_v11  ;;  %v391_v8 = vunpack.c.h.s8.bf16 %v377_v35  ;;  %v394_v9 = vunpack.c.l.s8.bf16 %v380_v7 }
  0xb1   : > { %v393_v11 = vunpack.c.l.s8.bf16 %v379_v10  ;;  %v396_v12 = vunpack.c.h.s8.bf16 %v380_v7  ;;  %v395_v13 = vunpack.c.h.s8.bf16 %v379_v10 }
  0xb2   : > { %v698_v19 = vpack.c.bf16 %v680_v15, %v679_v14  ;;  %v1689_v14 = vld [vmem:[%s2014_s4 + $0x20] sm:$0xff]   ;;  %v1690_v15 = vld [vmem:[%s2014_s4 + $0x28] sm:$0xff]  }
  0xb3   : > { %v546_v20 = vpop.permute.xlu0 %545  ;;  %v551_v21 = vpop.permute.xlu1 %550  ;;  %1634 = vmatprep.subr.bf16.mxu1 %v1689_v14 }
  0xb4   : > { %v663_v22 = vmul.f32 %v1442_v16, %v546_v20  ;;  %v664_v23 = vmul.f32 %v1443_v17, %v551_v21  ;;  %1556 = vmatprep.subr.bf16.mxu0 %v698_v19  ;;  %1635 = vmatpush3.bf16.msra.mxu1 %v1689_v14  ;;  %v1691_v16 = vld [vmem:[%s2014_s4 + $0x30] sm:$0xff]   ;;  %v1692_v17 = vld [vmem:[%s2014_s4 + $0x38] sm:$0xff]  }
  0xb5   : > { %1636 = vmatprep.subr.bf16.mxu1 %v1690_v15 }
  0xb6   : > { %v690_v27 = vpack.c.bf16 %v664_v23, %v663_v22 }
  0xb7   : > { %v636_v28 = vpop.permute.xlu0 %635  ;;  %v641_v29 = vpop.permute.xlu1 %640 }
  0xb8   : > { %v681_v30 = vmul.f32 %v1478_v24, %v636_v28  ;;  %v682_v31 = vmul.f32 %v1479_v25, %v641_v29  ;;  %1557 = vmatpush3.bf16.msra.mxu0 %v690_v27  ;;  %1637 = vmatpush3.bf16.msra.mxu1 %v1690_v15 }
  0xb9   : > { %1638 = vmatprep.subr.bf16.mxu1 %v1691_v16 }
  0xba   : > { %v699_v36 = vpack.c.bf16 %v682_v31, %v681_v30 }
  0xbb   : > { %v556_v37 = vpop.permute.xlu0 %555  ;;  %v561_v38 = vpop.permute.xlu1 %560 }
  0xbc   : > { %v665_v39 = vmul.f32 %v1446_v32, %v556_v37  ;;  %v666_v40 = vmul.f32 %v1447_v33, %v561_v38  ;;  %1558 = vmatprep.subr.bf16.mxu0 %v699_v36  ;;  %1639 = vmatpush3.bf16.msra.mxu1 %v1691_v16 }
  0xbd   : > { %1640 = vmatprep.subr.bf16.mxu1 %v1692_v17 }
  0xbe   : > { %v691_v44 = vpack.c.bf16 %v666_v40, %v665_v39 }
  0xbf   : > { %v646_v45 = vpop.permute.xlu0 %645  ;;  %v651_v46 = vpop.permute.xlu1 %650 }
  0xc0   : > { %v683_v47 = vmul.f32 %v1482_v41, %v646_v45  ;;  %v684_v48 = vmul.f32 %v1483_v42, %v651_v46  ;;  %1559 = vmatpush3.bf16.msra.mxu0 %v691_v44  ;;  %1641 = vmatpush3.bf16.msra.mxu1 %v1692_v17 }
  0xc2   : > { %v700_v51 = vpack.c.bf16 %v684_v48, %v683_v47 }
  0xc3   : > { %v566_v52 = vpop.permute.xlu0 %565  ;;  %v571_v53 = vpop.permute.xlu1 %570 }
  0xc4   : > { %v667_v54 = vmul.f32 %v1450_v49, %v566_v52  ;;  %v668_v55 = vmul.f32 %v1451_v50, %v571_v53  ;;  %1560 = vmatprep.subr.bf16.mxu0 %v700_v51 }
  0xc6   : > { %v692_v57 = vpack.c.bf16 %v668_v55, %v667_v54 }
  0xc7   : > { %v889_v24 = vpop.permute.xlu1 %888  ;;  %v884_v25 = vpop.permute.xlu0 %883 }
  0xc8   : > { %1561 = vmatpush3.bf16.msra.mxu0 %v692_v57 }
  0xcb   : > { %750 = vmatmul.mubr.bf16.vlgmr.msra.gmra.mrb[0].mxu0 %v381_v58  ;;  %v899_v36 = vpop.permute.xlu1 %898  ;;  %v894_v37 = vpop.permute.xlu0 %893 }
  0xcc   : > { %757 = vmatprep.mubr.bf16.mxu0 %v384_v59 }
  0xcf   : > { %v909_v47 = vpop.permute.xlu1 %908  ;;  %v904_v48 = vpop.permute.xlu0 %903 }
  0xd3   : > { %758 = vmatmul.mubr.bf16.gmra.mrb[4].mxu0 %v383_v61  ;;  %v919_v58 = vpop.permute.xlu1 %918  ;;  %v914_v59 = vpop.permute.xlu0 %913 }
  0xd4   : > { %765 = vmatprep.mubr.bf16.mxu0 %v386_v62 }
  0xd7   : > { %v929_v35 = vpop.permute.xlu1 %928 }
  0xdb   : > { %766 = vmatmul.mubr.bf16.gmra.mrb[8].mxu0 %v385_v0  ;;  %v939_v15 = vpop.permute.xlu1 %938 }
  0xdc   : > { %773 = vmatprep.mubr.bf16.mxu0 %v388_v1 }
  0xe3   : > { %774 = vmatmul.mubr.bf16.gmra.mrb[12].mxu0 %v387_v3 }
  0xe4   : > { %781 = vmatprep.mubr.bf16.mxu0 %v390_v4 }
  0xeb   : > { %782 = vmatmul.mubr.bf16.gmra.mrb[16].mxu0 %v389_v5  ;;  %v924_v5 = vpop.permute.xlu0 %923 }
  0xec   : > { %789 = vmatprep.mubr.bf16.mxu0 %v392_v6 }
  0xef   : > { %v934_v16 = vpop.permute.xlu0 %933 }
  0xf3   : > { %790 = vmatmul.mubr.bf16.gmra.mrb[20].mxu0 %v391_v8 }
  0xf4   : > { %797 = vmatprep.mubr.bf16.mxu0 %v394_v9 }
  0xfb   : > { %798 = vmatmul.mubr.bf16.gmra.mrb[24].mxu0 %v393_v11 }
  0xfc   : > { %805 = vmatprep.mubr.bf16.mxu0 %v396_v12 }
 0x103   : > { %806 = vmatmul.mubr.bf16.gmra.mrb[28].mxu0 %v395_v13 }
 0x19e   : > { %v1562_v18 = vpop.f32.mrb[0].mxu0 }
 0x19f   : > { %v1563_v19 = vpop.f32.mrb[1].mxu0 }
 0x1a0   : > { %v1564_v20 = vadd.f32 %v1563_v19, %v1562_v18  ;;  %v1565_v21 = vpop.f32.mrb[2].mxu0 }
 0x1a1   : > { %v1566_v22 = vpop.f32.mrb[3].mxu0 }
 0x1a2   : > { %v1567_v23 = vadd.f32 %v1566_v22, %v1565_v21  ;;  %v961_v26 = vmul.f32 %v1564_v20, %v884_v25 }
 0x1a4   : > { %v962_v27 = vmul.f32 %v1567_v23, %v889_v24 }
 0x1a6   : > { %v1568_v28 = vpop.f32.mrb[4].mxu0  ;;  %v977_v29 = vpack.c.bf16 %v962_v27, %v961_v26  ;;  %v949_v26 = vpop.permute.xlu1 %948 }
 0x1a7   : > { %v1569_v30 = vpop.f32.mrb[5].mxu0  ;;  %v944_v27 = vpop.permute.xlu0 %943 }
 0x1a8   : > { %v1570_v31 = vadd.f32 %v1569_v30, %v1568_v28  ;;  %v1571_v32 = vpop.f32.mrb[6].mxu0  ;;  %1642 = vmatprep.mubr.bf16.mxu1 %v977_v29 }
 0x1a9   : > { %v1572_v33 = vpop.f32.mrb[7].mxu0 }
 0x1aa   : > { %v1573_v34 = vadd.f32 %v1572_v33, %v1571_v32  ;;  %v963_v38 = vmul.f32 %v1570_v31, %v894_v37 }
 0x1ac   : > { %v964_v39 = vmul.f32 %v1573_v34, %v899_v36 }
 0x1ae   : > { %v1574_v40 = vpop.f32.mrb[8].mxu0  ;;  %v978_v41 = vpack.c.bf16 %v964_v39, %v963_v38  ;;  %v959_v38 = vpop.permute.xlu1 %958 }
 0x1af   : > { %v1575_v42 = vpop.f32.mrb[9].mxu0  ;;  %v954_v39 = vpop.permute.xlu0 %953 }
 0x1b0   : > { %v1576_v43 = vadd.f32 %v1575_v42, %v1574_v40  ;;  %v1577_v44 = vpop.f32.mrb[10].mxu0  ;;  %1643 = vmatmul.mubr.bf16.vlgmr.msra.gmra.mrb[0].mxu1 %v978_v41 }
 0x1b1   : > { %v1578_v45 = vpop.f32.mrb[11].mxu0 }
 0x1b2   : > { %v1579_v46 = vadd.f32 %v1578_v45, %v1577_v44  ;;  %v965_v49 = vmul.f32 %v1576_v43, %v904_v48  ;;  %v1376_v43 = vld [vmem:[%s2015_s5] ss:$0 sm:$0xff] }
 0x1b4   : > { %v966_v50 = vmul.f32 %v1579_v46, %v909_v47 }
 0x1b6   : > { %v1580_v51 = vpop.f32.mrb[12].mxu0  ;;  %v979_v52 = vpack.c.bf16 %v966_v50, %v965_v49 }
 0x1b7   : > { %v1581_v53 = vpop.f32.mrb[13].mxu0 }
 0x1b8   : > { %v1582_v54 = vadd.f32 %v1581_v53, %v1580_v51  ;;  %v1583_v55 = vpop.f32.mrb[14].mxu0  ;;  %1646 = vmatprep.mubr.bf16.mxu1 %v979_v52 }
 0x1b9   : > { %v1584_v56 = vpop.f32.mrb[15].mxu0 }
 0x1ba   : > { %v1585_v57 = vadd.f32 %v1584_v56, %v1583_v55  ;;  %v967_v60 = vmul.f32 %v1582_v54, %v914_v59 }
 0x1bc   : > { %v968_v61 = vmul.f32 %v1585_v57, %v919_v58 }
 0x1be   : > { %v1586_v62 = vpop.f32.mrb[16].mxu0  ;;  %v980_v63 = vpack.c.bf16 %v968_v61, %v967_v60 }
 0x1bf   : > { %v1587_v0 = vpop.f32.mrb[17].mxu0 }
 0x1c0   : > { %v1588_v1 = vadd.f32 %v1587_v0, %v1586_v62  ;;  %v1589_v2 = vpop.f32.mrb[18].mxu0  ;;  %1647 = vmatmul.mubr.bf16.gmra.mrb[4].mxu1 %v980_v63 }
 0x1c1   : > { %v1590_v3 = vpop.f32.mrb[19].mxu0 }
 0x1c2   : > { %v1591_v4 = vadd.f32 %v1590_v3, %v1589_v2  ;;  %v969_v6 = vmul.f32 %v1588_v1, %v924_v5 }
 0x1c4   : > { %v970_v7 = vmul.f32 %v1591_v4, %v929_v35 }
 0x1c6   : > { %v1592_v8 = vpop.f32.mrb[20].mxu0  ;;  %v981_v9 = vpack.c.bf16 %v970_v7, %v969_v6 }
 0x1c7   : > { %v1593_v10 = vpop.f32.mrb[21].mxu0 }
 0x1c8   : > { %v1594_v11 = vadd.f32 %v1593_v10, %v1592_v8  ;;  %v1595_v12 = vpop.f32.mrb[22].mxu0  ;;  %1650 = vmatprep.mubr.bf16.mxu1 %v981_v9 }
 0x1c9   : > { %v1596_v13 = vpop.f32.mrb[23].mxu0 }
 0x1ca   : > { %v1597_v14 = vadd.f32 %v1596_v13, %v1595_v12  ;;  %v971_v17 = vmul.f32 %v1594_v11, %v934_v16 }
 0x1cc   : > { %v972_v18 = vmul.f32 %v1597_v14, %v939_v15 }
 0x1ce   : > { %v1598_v19 = vpop.f32.mrb[24].mxu0  ;;  %v982_v20 = vpack.c.bf16 %v972_v18, %v971_v17 }
 0x1cf   : > { %v1599_v21 = vpop.f32.mrb[25].mxu0 }
 0x1d0   : > { %v1600_v22 = vadd.f32 %v1599_v21, %v1598_v19  ;;  %v1601_v23 = vpop.f32.mrb[26].mxu0  ;;  %1651 = vmatmul.mubr.bf16.gmra.mrb[8].mxu1 %v982_v20 }
 0x1d1   : > { %v1602_v24 = vpop.f32.mrb[27].mxu0 }
 0x1d2   : > { %v1603_v25 = vadd.f32 %v1602_v24, %v1601_v23  ;;  %v973_v28 = vmul.f32 %v1600_v22, %v944_v27 }
 0x1d4   : > { %v974_v29 = vmul.f32 %v1603_v25, %v949_v26 }
 0x1d6   : > { %v1604_v30 = vpop.f32.mrb[28].mxu0  ;;  %v983_v31 = vpack.c.bf16 %v974_v29, %v973_v28 }
 0x1d7   : > { %v1605_v32 = vpop.f32.mrb[29].mxu0 }
 0x1d8   : > { %v1606_v33 = vadd.f32 %v1605_v32, %v1604_v30  ;;  %v1607_v34 = vpop.f32.mrb[30].mxu0  ;;  %1654 = vmatprep.mubr.bf16.mxu1 %v983_v31 }
 0x1d9   : > { %v1608_v36 = vpop.f32.mrb[31].mxu0 }
 0x1da   : > { %v1609_v37 = vadd.f32 %v1608_v36, %v1607_v34  ;;  %v975_v40 = vmul.f32 %v1606_v33, %v954_v39 }
 0x1dc   : > { %v976_v41 = vmul.f32 %v1609_v37, %v959_v38 }
 0x1de   : > { %v984_v42 = vpack.c.bf16 %v976_v41, %v975_v40 }
 0x1e0   : > { %1655 = vmatmul.mubr.bf16.gmra.mrb[12].mxu1 %v984_v42 }
 0x283   : > { %v1644_v44 = vpop.f32.mrb[0].mxu1 }
 0x284   : > { %v1099_v45 = vadd.f32 %v1644_v44, %v1376_v43  ;;  %v1090_v46 = vpop.f32.mrb[1].mxu1 }
 0x285   : > { %v1091_v47 = vadd.f32 %v1376_v43, %v1090_v46  ;;  %v1645_v48 = vpop.f32.mrb[2].mxu1 }
 0x286   : > { %v1102_v49 = vadd.f32 %v1645_v48, %v1376_v43  ;;  %v1093_v50 = vpop.f32.mrb[3].mxu1  ;;  %v1155_v52 = vmax.f32 %v1099_v45, 0.0 }
 0x287   : > { %v1094_v51 = vadd.f32 %v1376_v43, %v1093_v50  ;;  %v1153_v54 = vmax.f32 %v1091_v47, 0.0 }
 0x288   : > { %v1156_v53 = vmax.f32 %v1102_v49, 0.0 }
 0x289   : > { %v1154_v55 = vmax.f32 %v1094_v51, 0.0 }
 0x28a   : > { %v1492_v56 = vpack.c.bf16 %v1156_v53, %v1155_v52 }
 0x28b   : > { %v1487_v57 = vpack.c.bf16 %v1154_v55, %v1153_v54 }
 0x28c   : > { %1539 = vst [vmem:[%s1991_s10 + $0x8] sm:$0xff] %v1492_v56  }
 0x28d   : > { %1488 = vst [vmem:[%s1991_s10] sm:$0xff] %v1487_v57  }
 0x293   : > { %v1648_v58 = vpop.f32.mrb[4].mxu1 }
 0x294   : > { %v1115_v59 = vadd.f32 %v1648_v58, %v1376_v43  ;;  %v1106_v60 = vpop.f32.mrb[5].mxu1 }
 0x295   : > { %v1107_v61 = vadd.f32 %v1376_v43, %v1106_v60  ;;  %v1649_v62 = vpop.f32.mrb[6].mxu1 }
 0x296   : > { %v1118_v63 = vadd.f32 %v1649_v62, %v1376_v43  ;;  %v1109_v0 = vpop.f32.mrb[7].mxu1  ;;  %v1159_v2 = vmax.f32 %v1115_v59, 0.0 }
 0x297   : > { %v1110_v1 = vadd.f32 %v1376_v43, %v1109_v0  ;;  %v1157_v4 = vmax.f32 %v1107_v61, 0.0 }
 0x298   : > { %v1160_v3 = vmax.f32 %v1118_v63, 0.0 }
 0x299   : > { %v1158_v35 = vmax.f32 %v1110_v1, 0.0 }
 0x29a   : > { %v1502_v5 = vpack.c.bf16 %v1160_v3, %v1159_v2 }
 0x29b   : > { %v1497_v6 = vpack.c.bf16 %v1158_v35, %v1157_v4 }
 0x29c   : > { %1541 = vst [vmem:[%s1991_s10 + $0x18] sm:$0xff] %v1502_v5  }
 0x29d   : > { %1540 = vst [vmem:[%s1991_s10 + $0x10] sm:$0xff] %v1497_v6  }
 0x2a3   : > { %v1652_v7 = vpop.f32.mrb[8].mxu1 }
 0x2a4   : > { %v1131_v8 = vadd.f32 %v1652_v7, %v1376_v43  ;;  %v1122_v9 = vpop.f32.mrb[9].mxu1 }
 0x2a5   : > { %v1123_v10 = vadd.f32 %v1376_v43, %v1122_v9  ;;  %v1653_v11 = vpop.f32.mrb[10].mxu1 }
 0x2a6   : > { %v1134_v12 = vadd.f32 %v1653_v11, %v1376_v43  ;;  %v1125_v13 = vpop.f32.mrb[11].mxu1  ;;  %v1163_v15 = vmax.f32 %v1131_v8, 0.0 }
 0x2a7   : > { %v1126_v14 = vadd.f32 %v1376_v43, %v1125_v13  ;;  %v1161_v17 = vmax.f32 %v1123_v10, 0.0 }
 0x2a8   : > { %v1164_v16 = vmax.f32 %v1134_v12, 0.0 }
 0x2a9   : > { %v1162_v18 = vmax.f32 %v1126_v14, 0.0 }
 0x2aa   : > { %v1512_v19 = vpack.c.bf16 %v1164_v16, %v1163_v15 }
 0x2ab   : > { %v1507_v20 = vpack.c.bf16 %v1162_v18, %v1161_v17 }
 0x2ac   : > { %1543 = vst [vmem:[%s1991_s10 + $0x28] sm:$0xff] %v1512_v19  }
 0x2ad   : > { %1542 = vst [vmem:[%s1991_s10 + $0x20] sm:$0xff] %v1507_v20  }
 0x2b3   : > { %v1656_v21 = vpop.f32.mrb[12].mxu1 }
 0x2b4   : > { %v1147_v22 = vadd.f32 %v1656_v21, %v1376_v43  ;;  %v1138_v23 = vpop.f32.mrb[13].mxu1 }
 0x2b5   : > { %v1139_v24 = vadd.f32 %v1376_v43, %v1138_v23  ;;  %v1657_v25 = vpop.f32.mrb[14].mxu1 }
 0x2b6   : > { %v1150_v26 = vadd.f32 %v1657_v25, %v1376_v43  ;;  %v1141_v27 = vpop.f32.mrb[15].mxu1  ;;  %v1167_v29 = vmax.f32 %v1147_v22, 0.0 }
 0x2b7   : > { %v1142_v28 = vadd.f32 %v1376_v43, %v1141_v27  ;;  %v1165_v31 = vmax.f32 %v1139_v24, 0.0 }
 0x2b8   : > { %v1168_v30 = vmax.f32 %v1150_v26, 0.0 }
 0x2b9   : > { %v1166_v32 = vmax.f32 %v1142_v28, 0.0 }
 0x2ba   : > { %v1522_v33 = vpack.c.bf16 %v1168_v30, %v1167_v29 }
 0x2bb   : > { %v1517_v34 = vpack.c.bf16 %v1166_v32, %v1165_v31 }
 0x2bc   : > { %1545 = vst [vmem:[%s1991_s10 + $0x38] sm:$0xff] %v1522_v33  }
 0x2bd   : > { %1544 = vst [vmem:[%s1991_s10 + $0x30] sm:$0xff] %v1517_v34  }
 0x2be PF: > { %s16_s23 = sadd.s32 1, %s1715_s23   ;;  %s2017_s21 = smov %s1711_s22 }
 0x2bf   : > { %p13_p6 = scmp.ge.s32.totalorder %s16_s23, 4   ;;  %s2018_s22 = smov %s2020_s24 }
 0x2c1   :  { %15 = sbr.rel (!%p13_p6) target bundleno = 2 (0x2), region = 91 }

// kernel: gcn_forward.5
= control target key start
LH: loop header
LB: loop body
LE: loop exit
PB: predicated region body
PF: predicated region fallthrough
CT: control target
= control target key end

     0   :  { %s1594_s21 = smov 0   ;;  %s1596_s22 = smov 0   ;;  %s1862_s0 = inlined_call_operand.vmem [shape: s8[256,256], index: 0, kind: input, shape index: {}]   ;;  %s1863_s1 = inlined_call_operand.vmem [shape: bf16[256,128], index: 1, kind: input, shape index: {}]   ;;  %s1864_s2 = inlined_call_operand.vmem [shape: f32[256,1], index: 2, kind: input, shape index: {}, may-alias: {2,3}]   ;;  %s1865_s3 = inlined_call_operand.vmem [shape: f32[256,1], index: 3, kind: input, shape index: {}, may-alias: {2,3}]   ;;  %s1866_s4 = inlined_call_operand.vmem [shape: bf16[128,128], index: 4, kind: input, shape index: {}]   ;;  %s1867_s5 = inlined_call_operand.vmem [shape: f32[1,128], index: 5, kind: input, shape index: {}]   ;;  %s1868_s6 = inlined_call_operand.vmem [shape: f32[256,128], index: 6, kind: output, shape index: {}]  }
   0x1   :  { %s1598_s23 = smov 0  }
   0x2 LB: > { %s28_s24 = sadd.s32 1, %s1552_s22  ;;  %p1288_p0 = scmp.ge.s32.totalorder %s1556_s23, 1  ;;  %s1556_s23 = sphi %s1598_s23, %s16_s23   ;;  %s1552_s22 = sphi %s1596_s22, %s1870_s22   ;;  %s1548_s21 = sphi %s1594_s21, %s1869_s21  }
   0x3   : > { %p30_p1 = scmp.ge.s32.totalorder %s28_s24, 2  ;;  %p266_p2 = scmp.lt.s32.totalorder %s1556_s23, 3 }
   0x5   : > { %s1872_s24 = smov (%p30_p1, %s28_s24), 0  ;;  %p267_p3 = pnand %p1288_p0, %p266_p2 }
   0x6   : > { %v477_v0 = vld [vmem:[%s1864_s2 + $0x80] sm:$0xff] (!%p267_p3)  ;;  %v1558_v2 = vmov (!%p267_p3), 0   ;;  %v478_v3 = vld [vmem:[%s1864_s2 + $0x88] sm:$0xff] (!%p267_p3)  ;;  %v479_v5 = vld [vmem:[%s1864_s2 + $0x90] sm:$0xff] (!%p267_p3)  ;;  %s1292_s9 = sshll.u32 (!%p267_p3), %s1548_s21, 4  ;;  %s1289_s27 = sshll.u32 (!%p267_p3), %s1548_s21, 2 }
   0x7   : > { %270 = sbr.rel (%p267_p3) target bundleno = 698 (0x2ba), region = 44  ;;  %v461_v1 = vld [vmem:[%s1864_s2] sm:$0xff] (!%p267_p3)  ;;  %1525 = vset.pattern.permute.xlu1 (!%p267_p3), %v1558_v2  ;;  %1524 = vset.pattern.permute.xlu0 (!%p267_p3), %v1558_v2  ;;  %v462_v4 = vld [vmem:[%s1864_s2 + $0x8] sm:$0xff] (!%p267_p3)  ;;  %v480_v6 = vld [vmem:[%s1864_s2 + $0x98] sm:$0xff] (!%p267_p3)  ;;  %p341_p4 = scmp.lt.s32.totalorder (!%p267_p3), %s1292_s9, 31 }
   0x8   : > { %575 = vperm.xlu0 (!%p267_p3), %1524, %v477_v0   ;;  %495 = vperm.xlu1 (!%p267_p3), %1525, %v461_v1   ;;  %v463_v7 = vld [vmem:[%s1864_s2 + $0x10] sm:$0xff] (!%p267_p3)  ;;  %v464_v8 = vld [vmem:[%s1864_s2 + $0x18] sm:$0xff] (!%p267_p3)  ;;  %v481_v9 = vld [vmem:[%s1864_s2 + $0xa0] sm:$0xff] (!%p267_p3)  ;;  %p318_p5 = scmp.lt.s32.totalorder (!%p267_p3), %s1289_s27, 7 }
   0x9   : > { %v482_v10 = vld [vmem:[%s1864_s2 + $0xa8] sm:$0xff] (!%p267_p3)  ;;  %v465_v11 = vld [vmem:[%s1864_s2 + $0x20] sm:$0xff] (!%p267_p3)  ;;  %v483_v13 = vld [vmem:[%s1864_s2 + $0xb0] sm:$0xff] (!%p267_p3) }
   0xa   : > { %v466_v12 = vld [vmem:[%s1864_s2 + $0x28] sm:$0xff] (!%p267_p3)  ;;  %v484_v14 = vld [vmem:[%s1864_s2 + $0xb8] sm:$0xff] (!%p267_p3)  ;;  %v467_v15 = vld [vmem:[%s1864_s2 + $0x30] sm:$0xff] (!%p267_p3) }
   0xb   : > { %v468_v16 = vld [vmem:[%s1864_s2 + $0x38] sm:$0xff] (!%p267_p3)  ;;  %v485_v17 = vld [vmem:[%s1864_s2 + $0xc0] sm:$0xff] (!%p267_p3)  ;;  %v486_v18 = vld [vmem:[%s1864_s2 + $0xc8] sm:$0xff] (!%p267_p3) }
   0xc   : > { %580 = vperm.xlu0 (!%p267_p3), %1524, %v478_v3   ;;  %500 = vperm.xlu1 (!%p267_p3), %1525, %v462_v4   ;;  %v469_v19 = vld [vmem:[%s1864_s2 + $0x40] sm:$0xff] (!%p267_p3)  ;;  %v470_v20 = vld [vmem:[%s1864_s2 + $0x48] sm:$0xff] (!%p267_p3)  ;;  %v487_v21 = vld [vmem:[%s1864_s2 + $0xd0] sm:$0xff] (!%p267_p3) }
   0xd   : > { %v488_v22 = vld [vmem:[%s1864_s2 + $0xd8] sm:$0xff] (!%p267_p3)  ;;  %v471_v23 = vld [vmem:[%s1864_s2 + $0x50] sm:$0xff] (!%p267_p3)  ;;  %v489_v25 = vld [vmem:[%s1864_s2 + $0xe0] sm:$0xff] (!%p267_p3) }
   0xe   : > { %v472_v24 = vld [vmem:[%s1864_s2 + $0x58] sm:$0xff]  ;;  %v490_v26 = vld [vmem:[%s1864_s2 + $0xe8] sm:$0xff]  ;;  %v473_v27 = vld [vmem:[%s1864_s2 + $0x60] sm:$0xff]  ;;  %s1874_s9 = smov (!%p341_p4, %s1292_s9), 31  ;;  %s1876_s27 = smov (!%p318_p5, %s1289_s27), 7 }
   0xf   : > { %v474_v28 = vld [vmem:[%s1864_s2 + $0x68] sm:$0xff]  ;;  %v491_v29 = vld [vmem:[%s1864_s2 + $0xf0] sm:$0xff]  ;;  %v492_v30 = vld [vmem:[%s1864_s2 + $0xf8] sm:$0xff]  ;;  %s1293_s26 = sshll.u32 %s1874_s9, 3  ;;  %s1307_s21 = sshll.u32 %s1876_s27, 4 }
  0x10   : > { %585 = vperm.xlu0 %1524, %v479_v5   ;;  %590 = vperm.xlu1 %1525, %v480_v6   ;;  %v475_v31 = vld [vmem:[%s1864_s2 + $0x70] sm:$0xff]  ;;  %v476_v32 = vld [vmem:[%s1864_s2 + $0x78] sm:$0xff]  ;;  %s1720_s11 = scalar_lea.vmem %s1865_s3, %s1293_s26  ;;  %s1727_s14 = scalar_lea.vmem %s1862_s0, %s1307_s21  ;;  %v1526_v51 = vld [vmem:[%s1866_s4] sm:$0xff]  }
  0x11   : > { %v866_v33 = vld [vmem:[%s1720_s11 + $0x8] sm:$0xff]  ;;  %v865_v34 = vld [vmem:[%s1720_s11] sm:$0xff]  ;;  %v868_v37 = vld [vmem:[%s1720_s11 + $0x18] sm:$0xff]  ;;  %1467 = vmatprep.subr.bf16.mxu1 %v1526_v51  ;;  %s1835_s21 = scalar_lea.vmem %s1868_s6, %s1293_s26 }
  0x12   : > { %v1730_v35 = vld [vmem:[%s1727_s14 + $0x8] sm:$0xff]  ;;  %v867_v38 = vld [vmem:[%s1720_s11 + $0x10] sm:$0xff]  ;;  %v869_v40 = vld [vmem:[%s1720_s11 + $0x20] sm:$0xff]  ;;  %1468 = vmatpush3.bf16.msra.mxu1 %v1526_v51 }
  0x13   : > { %v382_v36 = vunpack.c.l.s8.bf16 %v1730_v35  ;;  %v870_v39 = vld [vmem:[%s1720_s11 + $0x28] sm:$0xff]  ;;  %v872_v41 = vld [vmem:[%s1720_s11 + $0x38] sm:$0xff]  ;;  %v871_v42 = vld [vmem:[%s1720_s11 + $0x30] sm:$0xff] }
  0x14   : > { %505 = vperm.xlu0 %1524, %v463_v7   ;;  %510 = vperm.xlu1 %1525, %v464_v8   ;;  %v874_v43 = vld [vmem:[%s1720_s11 + $0x48] sm:$0xff]  ;;  %v873_v44 = vld [vmem:[%s1720_s11 + $0x40] sm:$0xff]  ;;  %v876_v45 = vld [vmem:[%s1720_s11 + $0x58] sm:$0xff] }
  0x15   : > { %749 = vmatprep.mubr.bf16.mxu0 %v382_v36  ;;  %v875_v46 = vld [vmem:[%s1720_s11 + $0x50] sm:$0xff]  ;;  %v878_v47 = vld [vmem:[%s1720_s11 + $0x68] sm:$0xff]  ;;  %v877_v48 = vld [vmem:[%s1720_s11 + $0x60] sm:$0xff] }
  0x16   : > { %v880_v49 = vld [vmem:[%s1720_s11 + $0x78] sm:$0xff]  ;;  %v879_v50 = vld [vmem:[%s1720_s11 + $0x70] sm:$0xff]  ;;  %v1527_v52 = vld [vmem:[%s1866_s4 + $0x8] sm:$0xff]  }
  0x17   : > { %v1379_v53 = vld [vmem:[%s1863_s1 + $0x40] sm:$0xff]   ;;  %1469 = vmatprep.subr.bf16.mxu1 %v1527_v52  ;;  %v1528_v57 = vld [vmem:[%s1866_s4 + $0x10] sm:$0xff]   ;;  %v1380_v62 = vld [vmem:[%s1863_s1 + $0x48] sm:$0xff]  }
  0x18   : > { %595 = vperm.xlu0 %1524, %v481_v9   ;;  %600 = vperm.xlu1 %1525, %v482_v10   ;;  %v1309_v54 = vld [vmem:[%s1863_s1] sm:$0xff]   ;;  %v1342_v58 = vunpack.c.l.bf16 %v1379_v53  ;;  %v1343_v60 = vunpack.c.h.bf16 %v1379_v53  ;;  %v1346_v1 = vunpack.c.l.bf16 %v1380_v62  ;;  %v1347_v2 = vunpack.c.h.bf16 %v1380_v62  ;;  %v1529_v3 = vld [vmem:[%s1866_s4 + $0x18] sm:$0xff]   ;;  %v1372_v8 = vld [vmem:[%s1863_s1 + $0x8] sm:$0xff]  }
  0x19   : > { %v1310_v59 = vunpack.c.l.bf16 %v1309_v54  ;;  %v1311_v61 = vunpack.c.h.bf16 %v1309_v54  ;;  %1470 = vmatpush3.bf16.msra.mxu1 %v1527_v52 }
  0x1a   : > { %1471 = vmatprep.subr.bf16.mxu1 %v1528_v57 }
  0x1c   : > { %515 = vperm.xlu0 %1524, %v465_v11   ;;  %520 = vperm.xlu1 %1525, %v466_v12  }
  0x1d   : > { %1472 = vmatpush3.bf16.msra.mxu1 %v1528_v57 }
  0x1e   : > { %1473 = vmatprep.subr.bf16.mxu1 %v1529_v3 }
  0x20   : > { %605 = vperm.xlu0 %1524, %v483_v13   ;;  %610 = vperm.xlu1 %1525, %v484_v14  }
  0x21   : > { %1474 = vmatpush3.bf16.msra.mxu1 %v1529_v3 }
  0x24   : > { %525 = vperm.xlu0 %1524, %v467_v15   ;;  %530 = vperm.xlu1 %1525, %v468_v16   ;;  %v1314_v15 = vunpack.c.l.bf16 %v1372_v8  ;;  %v1315_v16 = vunpack.c.h.bf16 %v1372_v8 }
  0x28   : > { %615 = vperm.xlu0 %1524, %v485_v17   ;;  %620 = vperm.xlu1 %1525, %v486_v18   ;;  %v1381_v17 = vld [vmem:[%s1863_s1 + $0x50] sm:$0xff]  }
  0x2c   : > { %535 = vperm.xlu0 %1524, %v469_v19   ;;  %540 = vperm.xlu1 %1525, %v470_v20  }
  0x30   : > { %625 = vperm.xlu0 %1524, %v487_v21   ;;  %630 = vperm.xlu1 %1525, %v488_v22  }
  0x34   : > { %545 = vperm.xlu0 %1524, %v471_v23   ;;  %550 = vperm.xlu1 %1525, %v472_v24   ;;  %v1350_v23 = vunpack.c.l.bf16 %v1381_v17  ;;  %v1351_v24 = vunpack.c.h.bf16 %v1381_v17 }
  0x38   : > { %635 = vperm.xlu0 %1524, %v489_v25   ;;  %640 = vperm.xlu1 %1525, %v490_v26   ;;  %v1373_v25 = vld [vmem:[%s1863_s1 + $0x10] sm:$0xff]  }
  0x3c   : > { %555 = vperm.xlu0 %1524, %v473_v27   ;;  %560 = vperm.xlu1 %1525, %v474_v28  }
  0x40   : > { %645 = vperm.xlu0 %1524, %v491_v29   ;;  %650 = vperm.xlu1 %1525, %v492_v30  }
  0x44   : > { %565 = vperm.xlu0 %1524, %v475_v31   ;;  %570 = vperm.xlu1 %1525, %v476_v32   ;;  %v1318_v31 = vunpack.c.l.bf16 %v1373_v25  ;;  %v1319_v32 = vunpack.c.h.bf16 %v1373_v25 }
  0x48   : > { %888 = vperm.xlu1 %1525, %v866_v33   ;;  %883 = vperm.xlu0 %1524, %v865_v34   ;;  %v1382_v33 = vld [vmem:[%s1863_s1 + $0x58] sm:$0xff]  }
  0x4c   : > { %898 = vperm.xlu1 %1525, %v868_v37   ;;  %893 = vperm.xlu0 %1524, %v867_v38  }
  0x50   : > { %908 = vperm.xlu1 %1525, %v870_v39   ;;  %903 = vperm.xlu0 %1524, %v869_v40   ;;  %v1354_v40 = vunpack.c.l.bf16 %v1382_v33 }
  0x54   : > { %918 = vperm.xlu1 %1525, %v872_v41   ;;  %913 = vperm.xlu0 %1524, %v871_v42   ;;  %v1355_v41 = vunpack.c.h.bf16 %v1382_v33  ;;  %v1374_v42 = vld [vmem:[%s1863_s1 + $0x18] sm:$0xff]  }
  0x58   : > { %928 = vperm.xlu1 %1525, %v874_v43   ;;  %923 = vperm.xlu0 %1524, %v873_v44  }
  0x5c   : > { %938 = vperm.xlu1 %1525, %v876_v45   ;;  %933 = vperm.xlu0 %1524, %v875_v46  }
  0x60   : > { %948 = vperm.xlu1 %1525, %v878_v47   ;;  %943 = vperm.xlu0 %1524, %v877_v48   ;;  %v1322_v48 = vunpack.c.l.bf16 %v1374_v42 }
  0x64   : > { %958 = vperm.xlu1 %1525, %v880_v49   ;;  %953 = vperm.xlu0 %1524, %v879_v50   ;;  %v1323_v49 = vunpack.c.h.bf16 %v1374_v42  ;;  %v1383_v50 = vld [vmem:[%s1863_s1 + $0x60] sm:$0xff]  }
  0x65   : > { %v1359_v57 = vunpack.c.h.bf16 %v1383_v50 }
  0x87   : > { %v576_v55 = vpop.permute.xlu0 %575  ;;  %v496_v56 = vpop.permute.xlu1 %495 }
  0x88   : > { %v669_v4 = vmul.f32 %v1342_v58, %v576_v55  ;;  %v653_v5 = vmul.f32 %v1310_v59, %v496_v56  ;;  %v1358_v56 = vunpack.c.l.bf16 %v1383_v50  ;;  %v1375_v58 = vld [vmem:[%s1863_s1 + $0x20] sm:$0xff]  }
  0x8b   : > { %v581_v63 = vpop.permute.xlu0 %580  ;;  %v501_v0 = vpop.permute.xlu1 %500 }
  0x8c   : > { %v670_v6 = vmul.f32 %v1343_v60, %v581_v63  ;;  %v654_v7 = vmul.f32 %v1311_v61, %v501_v0  ;;  %v1326_v0 = vunpack.c.l.bf16 %v1375_v58 }
  0x8e   : > { %v693_v9 = vpack.c.bf16 %v670_v6, %v669_v4  ;;  %v685_v10 = vpack.c.bf16 %v654_v7, %v653_v5 }
  0x8f   : > { %v586_v11 = vpop.permute.xlu0 %585  ;;  %v591_v12 = vpop.permute.xlu1 %590 }
  0x90   : > { %v671_v13 = vmul.f32 %v1346_v1, %v586_v11  ;;  %v672_v14 = vmul.f32 %v1347_v2, %v591_v12  ;;  %1387 = vmatprep.subr.bf16.mxu0 %v693_v9  ;;  %v1327_v1 = vunpack.c.h.bf16 %v1375_v58  ;;  %v1384_v2 = vld [vmem:[%s1863_s1 + $0x68] sm:$0xff]  }
  0x91   : > { %1388 = vmatpush3.bf16.msra.mxu0 %v685_v10  ;;  %v1362_v8 = vunpack.c.l.bf16 %v1384_v2  ;;  %v1363_v9 = vunpack.c.h.bf16 %v1384_v2  ;;  %v1376_v10 = vld [vmem:[%s1863_s1 + $0x28] sm:$0xff]  }
  0x92   : > { %v694_v18 = vpack.c.bf16 %v672_v14, %v671_v13  ;;  %v1331_v17 = vunpack.c.h.bf16 %v1376_v10  ;;  %v378_v2 = vld [vmem:[%s1727_s14 + $0x28] sm:$0xff] }
  0x93   : > { %v506_v19 = vpop.permute.xlu0 %505  ;;  %v511_v20 = vpop.permute.xlu1 %510 }
  0x94   : > { %v655_v21 = vmul.f32 %v1314_v15, %v506_v19  ;;  %v656_v22 = vmul.f32 %v1315_v16, %v511_v20  ;;  %1389 = vmatprep.subr.bf16.mxu0 %v694_v18  ;;  %v1330_v16 = vunpack.c.l.bf16 %v1376_v10  ;;  %v1385_v18 = vld [vmem:[%s1863_s1 + $0x70] sm:$0xff]  }
  0x95   : > { %v1367_v25 = vunpack.c.h.bf16 %v1385_v18  ;;  %v379_v10 = vld [vmem:[%s1727_s14 + $0x30] sm:$0xff] }
  0x96   : > { %v686_v26 = vpack.c.bf16 %v656_v22, %v655_v21 }
  0x97   : > { %v596_v27 = vpop.permute.xlu0 %595  ;;  %v601_v28 = vpop.permute.xlu1 %600 }
  0x98   : > { %v673_v29 = vmul.f32 %v1350_v23, %v596_v27  ;;  %v674_v30 = vmul.f32 %v1351_v24, %v601_v28  ;;  %1390 = vmatpush3.bf16.msra.mxu0 %v686_v26  ;;  %v1366_v24 = vunpack.c.l.bf16 %v1385_v18  ;;  %v1377_v26 = vld [vmem:[%s1863_s1 + $0x30] sm:$0xff]  }
  0x99   : > { %v1335_v33 = vunpack.c.h.bf16 %v1377_v26 }
  0x9a   : > { %v695_v34 = vpack.c.bf16 %v674_v30, %v673_v29 }
  0x9b   : > { %v516_v36 = vpop.permute.xlu0 %515  ;;  %v521_v37 = vpop.permute.xlu1 %520 }
  0x9c   : > { %v657_v38 = vmul.f32 %v1318_v31, %v516_v36  ;;  %v658_v39 = vmul.f32 %v1319_v32, %v521_v37  ;;  %1391 = vmatprep.subr.bf16.mxu0 %v695_v34  ;;  %v1334_v32 = vunpack.c.l.bf16 %v1377_v26  ;;  %v1386_v34 = vld [vmem:[%s1863_s1 + $0x78] sm:$0xff]  }
  0x9d   : > { %v1371_v42 = vunpack.c.h.bf16 %v1386_v34 }
  0x9e   : > { %v687_v43 = vpack.c.bf16 %v658_v39, %v657_v38 }
  0x9f   : > { %v606_v44 = vpop.permute.xlu0 %605  ;;  %v611_v45 = vpop.permute.xlu1 %610 }
  0xa0   : > { %v675_v46 = vmul.f32 %v1354_v40, %v606_v44  ;;  %v676_v47 = vmul.f32 %v1355_v41, %v611_v45  ;;  %1392 = vmatpush3.bf16.msra.mxu0 %v687_v43  ;;  %v1370_v41 = vunpack.c.l.bf16 %v1386_v34  ;;  %v1378_v43 = vld [vmem:[%s1863_s1 + $0x38] sm:$0xff]  }
  0xa1   : > { %v1339_v50 = vunpack.c.h.bf16 %v1378_v43 }
  0xa2   : > { %v696_v51 = vpack.c.bf16 %v676_v47, %v675_v46 }
  0xa3   : > { %v526_v52 = vpop.permute.xlu0 %525  ;;  %v531_v53 = vpop.permute.xlu1 %530 }
  0xa4   : > { %v659_v54 = vmul.f32 %v1322_v48, %v526_v52  ;;  %v660_v55 = vmul.f32 %v1323_v49, %v531_v53  ;;  %1393 = vmatprep.subr.bf16.mxu0 %v696_v51  ;;  %v1338_v49 = vunpack.c.l.bf16 %v1378_v43 }
  0xa6   : > { %v688_v59 = vpack.c.bf16 %v660_v55, %v659_v54 }
  0xa7   : > { %v616_v60 = vpop.permute.xlu0 %615  ;;  %v621_v61 = vpop.permute.xlu1 %620 }
  0xa8   : > { %v677_v62 = vmul.f32 %v1358_v56, %v616_v60  ;;  %v678_v63 = vmul.f32 %v1359_v57, %v621_v61  ;;  %1394 = vmatpush3.bf16.msra.mxu0 %v688_v59  ;;  %v373_v56 = vld [vmem:[%s1727_s14] sm:$0xff]  ;;  %v384_v59 = vunpack.c.h.s8.bf16 %v1730_v35  ;;  %v376_v60 = vld [vmem:[%s1727_s14 + $0x18] sm:$0xff] }
  0xa9   : > { %v381_v58 = vunpack.c.l.s8.bf16 %v373_v56  ;;  %v383_v61 = vunpack.c.h.s8.bf16 %v373_v56  ;;  %v377_v35 = vld [vmem:[%s1727_s14 + $0x20] sm:$0xff] }
  0xaa   : > { %v697_v3 = vpack.c.bf16 %v678_v63, %v677_v62  ;;  %v386_v62 = vunpack.c.l.s8.bf16 %v376_v60  ;;  %v375_v63 = vld [vmem:[%s1727_s14 + $0x10] sm:$0xff] }
  0xab   : > { %v536_v4 = vpop.permute.xlu0 %535  ;;  %v541_v5 = vpop.permute.xlu1 %540 }
  0xac   : > { %v661_v6 = vmul.f32 %v1326_v0, %v536_v4  ;;  %v662_v7 = vmul.f32 %v1327_v1, %v541_v5  ;;  %1395 = vmatprep.subr.bf16.mxu0 %v697_v3  ;;  %v385_v0 = vunpack.c.l.s8.bf16 %v375_v63  ;;  %v388_v1 = vunpack.c.h.s8.bf16 %v376_v60 }
  0xad   : > { %v387_v3 = vunpack.c.h.s8.bf16 %v375_v63  ;;  %v390_v4 = vunpack.c.l.s8.bf16 %v378_v2  ;;  %v389_v5 = vunpack.c.l.s8.bf16 %v377_v35 }
  0xae   : > { %v689_v11 = vpack.c.bf16 %v662_v7, %v661_v6  ;;  %v392_v6 = vunpack.c.h.s8.bf16 %v378_v2  ;;  %v380_v7 = vld [vmem:[%s1727_s14 + $0x38] sm:$0xff] }
  0xaf   : > { %v626_v12 = vpop.permute.xlu0 %625  ;;  %v631_v13 = vpop.permute.xlu1 %630 }
  0xb0   : > { %v679_v14 = vmul.f32 %v1362_v8, %v626_v12  ;;  %v680_v15 = vmul.f32 %v1363_v9, %v631_v13  ;;  %1396 = vmatpush3.bf16.msra.mxu0 %v689_v11  ;;  %v391_v8 = vunpack.c.h.s8.bf16 %v377_v35  ;;  %v394_v9 = vunpack.c.l.s8.bf16 %v380_v7 }
  0xb1   : > { %v393_v11 = vunpack.c.l.s8.bf16 %v379_v10  ;;  %v396_v12 = vunpack.c.h.s8.bf16 %v380_v7  ;;  %v395_v13 = vunpack.c.h.s8.bf16 %v379_v10 }
  0xb2   : > { %v698_v19 = vpack.c.bf16 %v680_v15, %v679_v14  ;;  %v1530_v14 = vld [vmem:[%s1866_s4 + $0x20] sm:$0xff]   ;;  %v1531_v15 = vld [vmem:[%s1866_s4 + $0x28] sm:$0xff]  }
  0xb3   : > { %v546_v20 = vpop.permute.xlu0 %545  ;;  %v551_v21 = vpop.permute.xlu1 %550  ;;  %1475 = vmatprep.subr.bf16.mxu1 %v1530_v14 }
  0xb4   : > { %v663_v22 = vmul.f32 %v1330_v16, %v546_v20  ;;  %v664_v23 = vmul.f32 %v1331_v17, %v551_v21  ;;  %1397 = vmatprep.subr.bf16.mxu0 %v698_v19  ;;  %1476 = vmatpush3.bf16.msra.mxu1 %v1530_v14  ;;  %v1532_v16 = vld [vmem:[%s1866_s4 + $0x30] sm:$0xff]   ;;  %v1533_v17 = vld [vmem:[%s1866_s4 + $0x38] sm:$0xff]  }
  0xb5   : > { %1477 = vmatprep.subr.bf16.mxu1 %v1531_v15 }
  0xb6   : > { %v690_v27 = vpack.c.bf16 %v664_v23, %v663_v22 }
  0xb7   : > { %v636_v28 = vpop.permute.xlu0 %635  ;;  %v641_v29 = vpop.permute.xlu1 %640 }
  0xb8   : > { %v681_v30 = vmul.f32 %v1366_v24, %v636_v28  ;;  %v682_v31 = vmul.f32 %v1367_v25, %v641_v29  ;;  %1398 = vmatpush3.bf16.msra.mxu0 %v690_v27  ;;  %1478 = vmatpush3.bf16.msra.mxu1 %v1531_v15 }
  0xb9   : > { %1479 = vmatprep.subr.bf16.mxu1 %v1532_v16 }
  0xba   : > { %v699_v36 = vpack.c.bf16 %v682_v31, %v681_v30 }
  0xbb   : > { %v556_v37 = vpop.permute.xlu0 %555  ;;  %v561_v38 = vpop.permute.xlu1 %560 }
  0xbc   : > { %v665_v39 = vmul.f32 %v1334_v32, %v556_v37  ;;  %v666_v40 = vmul.f32 %v1335_v33, %v561_v38  ;;  %1399 = vmatprep.subr.bf16.mxu0 %v699_v36  ;;  %1480 = vmatpush3.bf16.msra.mxu1 %v1532_v16 }
  0xbd   : > { %1481 = vmatprep.subr.bf16.mxu1 %v1533_v17 }
  0xbe   : > { %v691_v44 = vpack.c.bf16 %v666_v40, %v665_v39 }
  0xbf   : > { %v646_v45 = vpop.permute.xlu0 %645  ;;  %v651_v46 = vpop.permute.xlu1 %650 }
  0xc0   : > { %v683_v47 = vmul.f32 %v1370_v41, %v646_v45  ;;  %v684_v48 = vmul.f32 %v1371_v42, %v651_v46  ;;  %1400 = vmatpush3.bf16.msra.mxu0 %v691_v44  ;;  %1482 = vmatpush3.bf16.msra.mxu1 %v1533_v17 }
  0xc2   : > { %v700_v51 = vpack.c.bf16 %v684_v48, %v683_v47 }
  0xc3   : > { %v566_v52 = vpop.permute.xlu0 %565  ;;  %v571_v53 = vpop.permute.xlu1 %570 }
  0xc4   : > { %v667_v54 = vmul.f32 %v1338_v49, %v566_v52  ;;  %v668_v55 = vmul.f32 %v1339_v50, %v571_v53  ;;  %1401 = vmatprep.subr.bf16.mxu0 %v700_v51 }
  0xc6   : > { %v692_v57 = vpack.c.bf16 %v668_v55, %v667_v54 }
  0xc7   : > { %v889_v24 = vpop.permute.xlu1 %888  ;;  %v884_v25 = vpop.permute.xlu0 %883 }
  0xc8   : > { %1402 = vmatpush3.bf16.msra.mxu0 %v692_v57 }
  0xcb   : > { %750 = vmatmul.mubr.bf16.vlgmr.msra.gmra.mrb[0].mxu0 %v381_v58  ;;  %v899_v36 = vpop.permute.xlu1 %898  ;;  %v894_v37 = vpop.permute.xlu0 %893 }
  0xcc   : > { %757 = vmatprep.mubr.bf16.mxu0 %v384_v59 }
  0xcf   : > { %v909_v47 = vpop.permute.xlu1 %908  ;;  %v904_v48 = vpop.permute.xlu0 %903 }
  0xd3   : > { %758 = vmatmul.mubr.bf16.gmra.mrb[4].mxu0 %v383_v61  ;;  %v919_v58 = vpop.permute.xlu1 %918  ;;  %v914_v59 = vpop.permute.xlu0 %913 }
  0xd4   : > { %765 = vmatprep.mubr.bf16.mxu0 %v386_v62 }
  0xd7   : > { %v929_v35 = vpop.permute.xlu1 %928 }
  0xdb   : > { %766 = vmatmul.mubr.bf16.gmra.mrb[8].mxu0 %v385_v0  ;;  %v939_v15 = vpop.permute.xlu1 %938 }
  0xdc   : > { %773 = vmatprep.mubr.bf16.mxu0 %v388_v1 }
  0xe3   : > { %774 = vmatmul.mubr.bf16.gmra.mrb[12].mxu0 %v387_v3 }
  0xe4   : > { %781 = vmatprep.mubr.bf16.mxu0 %v390_v4 }
  0xeb   : > { %782 = vmatmul.mubr.bf16.gmra.mrb[16].mxu0 %v389_v5  ;;  %v924_v5 = vpop.permute.xlu0 %923 }
  0xec   : > { %789 = vmatprep.mubr.bf16.mxu0 %v392_v6 }
  0xef   : > { %v934_v16 = vpop.permute.xlu0 %933 }
  0xf3   : > { %790 = vmatmul.mubr.bf16.gmra.mrb[20].mxu0 %v391_v8 }
  0xf4   : > { %797 = vmatprep.mubr.bf16.mxu0 %v394_v9 }
  0xfb   : > { %798 = vmatmul.mubr.bf16.gmra.mrb[24].mxu0 %v393_v11 }
  0xfc   : > { %805 = vmatprep.mubr.bf16.mxu0 %v396_v12 }
 0x103   : > { %806 = vmatmul.mubr.bf16.gmra.mrb[28].mxu0 %v395_v13 }
 0x19e   : > { %v1403_v18 = vpop.f32.mrb[0].mxu0 }
 0x19f   : > { %v1404_v19 = vpop.f32.mrb[1].mxu0 }
 0x1a0   : > { %v1405_v20 = vadd.f32 %v1404_v19, %v1403_v18  ;;  %v1406_v21 = vpop.f32.mrb[2].mxu0 }
 0x1a1   : > { %v1407_v22 = vpop.f32.mrb[3].mxu0 }
 0x1a2   : > { %v1408_v23 = vadd.f32 %v1407_v22, %v1406_v21  ;;  %v961_v26 = vmul.f32 %v1405_v20, %v884_v25 }
 0x1a4   : > { %v962_v27 = vmul.f32 %v1408_v23, %v889_v24 }
 0x1a6   : > { %v1409_v28 = vpop.f32.mrb[4].mxu0  ;;  %v977_v29 = vpack.c.bf16 %v962_v27, %v961_v26  ;;  %v949_v26 = vpop.permute.xlu1 %948 }
 0x1a7   : > { %v1410_v30 = vpop.f32.mrb[5].mxu0  ;;  %v944_v27 = vpop.permute.xlu0 %943 }
 0x1a8   : > { %v1411_v31 = vadd.f32 %v1410_v30, %v1409_v28  ;;  %v1412_v32 = vpop.f32.mrb[6].mxu0  ;;  %1483 = vmatprep.mubr.bf16.mxu1 %v977_v29 }
 0x1a9   : > { %v1413_v33 = vpop.f32.mrb[7].mxu0 }
 0x1aa   : > { %v1414_v34 = vadd.f32 %v1413_v33, %v1412_v32  ;;  %v963_v38 = vmul.f32 %v1411_v31, %v894_v37 }
 0x1ac   : > { %v964_v39 = vmul.f32 %v1414_v34, %v899_v36 }
 0x1ae   : > { %v1415_v40 = vpop.f32.mrb[8].mxu0  ;;  %v978_v41 = vpack.c.bf16 %v964_v39, %v963_v38  ;;  %v959_v38 = vpop.permute.xlu1 %958 }
 0x1af   : > { %v1416_v42 = vpop.f32.mrb[9].mxu0  ;;  %v954_v39 = vpop.permute.xlu0 %953 }
 0x1b0   : > { %v1417_v43 = vadd.f32 %v1416_v42, %v1415_v40  ;;  %v1418_v44 = vpop.f32.mrb[10].mxu0  ;;  %1484 = vmatmul.mubr.bf16.vlgmr.msra.gmra.mrb[0].mxu1 %v978_v41 }
 0x1b1   : > { %v1419_v45 = vpop.f32.mrb[11].mxu0 }
 0x1b2   : > { %v1420_v46 = vadd.f32 %v1419_v45, %v1418_v44  ;;  %v965_v49 = vmul.f32 %v1417_v43, %v904_v48  ;;  %v1296_v43 = vld [vmem:[%s1867_s5] ss:$0 sm:$0xff] }
 0x1b4   : > { %v966_v50 = vmul.f32 %v1420_v46, %v909_v47 }
 0x1b6   : > { %v1421_v51 = vpop.f32.mrb[12].mxu0  ;;  %v979_v52 = vpack.c.bf16 %v966_v50, %v965_v49 }
 0x1b7   : > { %v1422_v53 = vpop.f32.mrb[13].mxu0 }
 0x1b8   : > { %v1423_v54 = vadd.f32 %v1422_v53, %v1421_v51  ;;  %v1424_v55 = vpop.f32.mrb[14].mxu0  ;;  %1487 = vmatprep.mubr.bf16.mxu1 %v979_v52 }
 0x1b9   : > { %v1425_v56 = vpop.f32.mrb[15].mxu0 }
 0x1ba   : > { %v1426_v57 = vadd.f32 %v1425_v56, %v1424_v55  ;;  %v967_v60 = vmul.f32 %v1423_v54, %v914_v59 }
 0x1bc   : > { %v968_v61 = vmul.f32 %v1426_v57, %v919_v58 }
 0x1be   : > { %v1427_v62 = vpop.f32.mrb[16].mxu0  ;;  %v980_v63 = vpack.c.bf16 %v968_v61, %v967_v60 }
 0x1bf   : > { %v1428_v0 = vpop.f32.mrb[17].mxu0 }
 0x1c0   : > { %v1429_v1 = vadd.f32 %v1428_v0, %v1427_v62  ;;  %v1430_v2 = vpop.f32.mrb[18].mxu0  ;;  %1488 = vmatmul.mubr.bf16.gmra.mrb[4].mxu1 %v980_v63 }
 0x1c1   : > { %v1431_v3 = vpop.f32.mrb[19].mxu0 }
 0x1c2   : > { %v1432_v4 = vadd.f32 %v1431_v3, %v1430_v2  ;;  %v969_v6 = vmul.f32 %v1429_v1, %v924_v5 }
 0x1c4   : > { %v970_v7 = vmul.f32 %v1432_v4, %v929_v35 }
 0x1c6   : > { %v1433_v8 = vpop.f32.mrb[20].mxu0  ;;  %v981_v9 = vpack.c.bf16 %v970_v7, %v969_v6 }
 0x1c7   : > { %v1434_v10 = vpop.f32.mrb[21].mxu0 }
 0x1c8   : > { %v1435_v11 = vadd.f32 %v1434_v10, %v1433_v8  ;;  %v1436_v12 = vpop.f32.mrb[22].mxu0  ;;  %1491 = vmatprep.mubr.bf16.mxu1 %v981_v9 }
 0x1c9   : > { %v1437_v13 = vpop.f32.mrb[23].mxu0 }
 0x1ca   : > { %v1438_v14 = vadd.f32 %v1437_v13, %v1436_v12  ;;  %v971_v17 = vmul.f32 %v1435_v11, %v934_v16 }
 0x1cc   : > { %v972_v18 = vmul.f32 %v1438_v14, %v939_v15 }
 0x1ce   : > { %v1439_v19 = vpop.f32.mrb[24].mxu0  ;;  %v982_v20 = vpack.c.bf16 %v972_v18, %v971_v17 }
 0x1cf   : > { %v1440_v21 = vpop.f32.mrb[25].mxu0 }
 0x1d0   : > { %v1441_v22 = vadd.f32 %v1440_v21, %v1439_v19  ;;  %v1442_v23 = vpop.f32.mrb[26].mxu0  ;;  %1492 = vmatmul.mubr.bf16.gmra.mrb[8].mxu1 %v982_v20 }
 0x1d1   : > { %v1443_v24 = vpop.f32.mrb[27].mxu0 }
 0x1d2   : > { %v1444_v25 = vadd.f32 %v1443_v24, %v1442_v23  ;;  %v973_v28 = vmul.f32 %v1441_v22, %v944_v27 }
 0x1d4   : > { %v974_v29 = vmul.f32 %v1444_v25, %v949_v26 }
 0x1d6   : > { %v1445_v30 = vpop.f32.mrb[28].mxu0  ;;  %v983_v31 = vpack.c.bf16 %v974_v29, %v973_v28 }
 0x1d7   : > { %v1446_v32 = vpop.f32.mrb[29].mxu0 }
 0x1d8   : > { %v1447_v33 = vadd.f32 %v1446_v32, %v1445_v30  ;;  %v1448_v34 = vpop.f32.mrb[30].mxu0  ;;  %1495 = vmatprep.mubr.bf16.mxu1 %v983_v31 }
 0x1d9   : > { %v1449_v36 = vpop.f32.mrb[31].mxu0 }
 0x1da   : > { %v1450_v37 = vadd.f32 %v1449_v36, %v1448_v34  ;;  %v975_v40 = vmul.f32 %v1447_v33, %v954_v39 }
 0x1dc   : > { %v976_v41 = vmul.f32 %v1450_v37, %v959_v38 }
 0x1de   : > { %v984_v42 = vpack.c.bf16 %v976_v41, %v975_v40 }
 0x1e0   : > { %1496 = vmatmul.mubr.bf16.gmra.mrb[12].mxu1 %v984_v42 }
 0x283   : > { %v1485_v44 = vpop.f32.mrb[0].mxu1 }
 0x284   : > { %v1099_v45 = vadd.f32 %v1485_v44, %v1296_v43  ;;  %v1090_v46 = vpop.f32.mrb[1].mxu1 }
 0x285   : > { %v1091_v47 = vadd.f32 %v1296_v43, %v1090_v46  ;;  %v1486_v48 = vpop.f32.mrb[2].mxu1 }
 0x286   : > { %1155 = vst [vmem:[%s1835_s21 + $0x10] sm:$0xff] %v1099_v45  ;;  %v1102_v49 = vadd.f32 %v1486_v48, %v1296_v43  ;;  %v1093_v50 = vpop.f32.mrb[3].mxu1 }
 0x287   : > { %1153 = vst [vmem:[%s1835_s21] sm:$0xff] %v1091_v47  ;;  %v1094_v51 = vadd.f32 %v1296_v43, %v1093_v50 }
 0x288   : > { %1156 = vst [vmem:[%s1835_s21 + $0x18] sm:$0xff] %v1102_v49 }
 0x289   : > { %1154 = vst [vmem:[%s1835_s21 + $0x8] sm:$0xff] %v1094_v51 }
 0x293   : > { %v1489_v52 = vpop.f32.mrb[4].mxu1 }
 0x294   : > { %v1115_v53 = vadd.f32 %v1489_v52, %v1296_v43  ;;  %v1106_v54 = vpop.f32.mrb[5].mxu1 }
 0x295   : > { %v1107_v55 = vadd.f32 %v1296_v43, %v1106_v54  ;;  %v1490_v56 = vpop.f32.mrb[6].mxu1 }
 0x296   : > { %1159 = vst [vmem:[%s1835_s21 + $0x30] sm:$0xff] %v1115_v53  ;;  %v1118_v57 = vadd.f32 %v1490_v56, %v1296_v43  ;;  %v1109_v58 = vpop.f32.mrb[7].mxu1 }
 0x297   : > { %1157 = vst [vmem:[%s1835_s21 + $0x20] sm:$0xff] %v1107_v55  ;;  %v1110_v59 = vadd.f32 %v1296_v43, %v1109_v58 }
 0x298   : > { %1160 = vst [vmem:[%s1835_s21 + $0x38] sm:$0xff] %v1118_v57 }
 0x299   : > { %1158 = vst [vmem:[%s1835_s21 + $0x28] sm:$0xff] %v1110_v59 }
 0x2a3   : > { %v1493_v60 = vpop.f32.mrb[8].mxu1 }
 0x2a4   : > { %v1131_v61 = vadd.f32 %v1493_v60, %v1296_v43  ;;  %v1122_v62 = vpop.f32.mrb[9].mxu1 }
 0x2a5   : > { %v1123_v63 = vadd.f32 %v1296_v43, %v1122_v62  ;;  %v1494_v0 = vpop.f32.mrb[10].mxu1 }
 0x2a6   : > { %1163 = vst [vmem:[%s1835_s21 + $0x50] sm:$0xff] %v1131_v61  ;;  %v1134_v1 = vadd.f32 %v1494_v0, %v1296_v43  ;;  %v1125_v2 = vpop.f32.mrb[11].mxu1 }
 0x2a7   : > { %1161 = vst [vmem:[%s1835_s21 + $0x40] sm:$0xff] %v1123_v63  ;;  %v1126_v3 = vadd.f32 %v1296_v43, %v1125_v2 }
 0x2a8   : > { %1164 = vst [vmem:[%s1835_s21 + $0x58] sm:$0xff] %v1134_v1 }
 0x2a9   : > { %1162 = vst [vmem:[%s1835_s21 + $0x48] sm:$0xff] %v1126_v3 }
 0x2b3   : > { %v1497_v4 = vpop.f32.mrb[12].mxu1 }
 0x2b4   : > { %v1147_v35 = vadd.f32 %v1497_v4, %v1296_v43  ;;  %v1138_v5 = vpop.f32.mrb[13].mxu1 }
 0x2b5   : > { %v1139_v6 = vadd.f32 %v1296_v43, %v1138_v5  ;;  %v1498_v7 = vpop.f32.mrb[14].mxu1 }
 0x2b6   : > { %1167 = vst [vmem:[%s1835_s21 + $0x70] sm:$0xff] %v1147_v35  ;;  %v1150_v8 = vadd.f32 %v1498_v7, %v1296_v43  ;;  %v1141_v9 = vpop.f32.mrb[15].mxu1 }
 0x2b7   : > { %1165 = vst [vmem:[%s1835_s21 + $0x60] sm:$0xff] %v1139_v6  ;;  %v1142_v10 = vadd.f32 %v1296_v43, %v1141_v9 }
 0x2b8   : > { %1168 = vst [vmem:[%s1835_s21 + $0x78] sm:$0xff] %v1150_v8 }
 0x2b9   : > { %1166 = vst [vmem:[%s1835_s21 + $0x68] sm:$0xff] %v1142_v10 }
 0x2ba PF: > { %s16_s23 = sadd.s32 1, %s1556_s23   ;;  %s1869_s21 = smov %s1552_s22 }
 0x2bb   : > { %p13_p6 = scmp.ge.s32.totalorder %s16_s23, 4   ;;  %s1870_s22 = smov %s1872_s24 }
 0x2bd   :  { %15 = sbr.rel (!%p13_p6) target bundleno = 2 (0x2), region = 91 }

</bundles_post_ra>
